<compile_context>
chip_gen: v7x
topology: tpu7x:2x2x1
jax: 0.10.0
libtpu: 0.0.40
codegen_flags: <defaults>
</compile_context>

<pallas_src>
import jax
import jax.numpy as jnp
from jax.experimental import pallas as pl
from jax.experimental.pallas import tpu as pltpu

INPUT_DIM = 770
INPUT_DIM_MAIN = 768          # lane-aligned part of the input
INPUT_DIM_TAIL = INPUT_DIM - INPUT_DIM_MAIN   # 2 leftover columns
HIDDEN_DIM = 768
NUM_SEGMENTS = 8


def _round_up(x, m):
    return (x + m - 1) // m * m


# ---------------------------------------------------------------------------
# Kernels
# ---------------------------------------------------------------------------
def _adapter_seg_kernel(x_ref, w_ref, tail_ref, b_ref, seg_ids_ref, o_ref):
    # x_ref:       (TM, 770)  f32   -- row tile of the flattened input
    # w_ref:       (768, 768) bf16  -- pre-transposed weight (lane-aligned K), resident
    # tail_ref:    (10, 768)  bf16  -- [segment_emb (8 rows) ; W^T[768:770, :] (2 rows)]
    # b_ref:       (1, 768)   f32   -- linear bias (added on VPU in f32)
    # seg_ids_ref: (TM, 1)    int32 -- per-row segment ids
    # o_ref:       (TM, 768)
    x_main = x_ref[:, :INPUT_DIM_MAIN].astype(jnp.bfloat16)               # (TM, 768)
    acc = jnp.dot(x_main, w_ref[...], preferred_element_type=jnp.float32)  # (TM, 768) f32

    ids = seg_ids_ref[...]                                                  # (TM, 1)
    iota = jax.lax.broadcasted_iota(jnp.int32, (ids.shape[0], NUM_SEGMENTS), 1)
    one_hot = (ids == iota).astype(jnp.bfloat16)                            # (TM, 8)
    x_tail = x_ref[:, INPUT_DIM_MAIN:INPUT_DIM].astype(jnp.bfloat16)        # (TM, 2)
    small = jnp.concatenate([one_hot, x_tail], axis=1)                      # (TM, 10)
    acc = acc + jnp.dot(small, tail_ref[...], preferred_element_type=jnp.float32)

    o_ref[...] = (acc + b_ref[...]).astype(o_ref.dtype)


def _adapter_bias_kernel(x_ref, w_ref, tail_ref, b_ref, o_ref):
    # Same as above but without segment ids: only the 2-column tail matmul + f32 bias.
    x_main = x_ref[:, :INPUT_DIM_MAIN].astype(jnp.bfloat16)
    acc = jnp.dot(x_main, w_ref[...], preferred_element_type=jnp.float32)
    x_tail = x_ref[:, INPUT_DIM_MAIN:INPUT_DIM].astype(jnp.bfloat16)        # (TM, 2)
    acc = acc + jnp.dot(x_tail, tail_ref[...], preferred_element_type=jnp.float32)
    o_ref[...] = (acc + b_ref[...]).astype(o_ref.dtype)


# ---------------------------------------------------------------------------
# One-time parameter preparation (hoisted out of the per-call forward path)
# ---------------------------------------------------------------------------
def prepare_adapter_params(weight, bias, segment_emb):
    """weight: (768, 770) nn.Linear layout; bias: (768,); segment_emb: (8, 768)."""
    w_t = jnp.asarray(weight, jnp.float32).T                                 # (770, 768)
    w_main = w_t[:INPUT_DIM_MAIN].astype(jnp.bfloat16)                       # (768, 768)
    w_tail = w_t[INPUT_DIM_MAIN:].astype(jnp.bfloat16)                       # (2, 768)
    b_row = jnp.asarray(bias, jnp.float32).reshape(1, HIDDEN_DIM)            # (1, 768)
    seg_bf16 = jnp.asarray(segment_emb, jnp.float32).astype(jnp.bfloat16)    # (8, 768)
    seg_tail_tab = jnp.concatenate([seg_bf16, w_tail], axis=0)               # (10, 768)
    return w_main, w_tail, b_row, seg_tail_tab


# ---------------------------------------------------------------------------
# Forward
# ---------------------------------------------------------------------------
def prefix_adapter_forward(x, w_main, w_tail, b_row, seg_tail_tab, segment_ids=None, *,
                           tm=1024, out_dtype=jnp.float32,
                           vmem_limit_bytes=32 * 1024 * 1024):
    """
    x            : (B, L, 770) float32
    w_main       : (768, 768) bf16   (from prepare_adapter_params)
    w_tail       : (2, 768)   bf16
    b_row        : (1, 768)   f32
    seg_tail_tab : (10, 768)  bf16   ([segment_emb ; w_tail])
    segment_ids  : optional int (B, L)
    returns      : (B, L, 768) out_dtype (default float32)
    """
    B, L, D = x.shape
    assert D == INPUT_DIM
    M = B * L
    N = HIDDEN_DIM

    x_flat = x.reshape(M, D)                      # free view: no padding, no cast in HBM
    TM = min(tm, _round_up(M, 8))                 # sublane-aligned row tile
    grid = (pl.cdiv(M, TM),)

    compiler_params = pltpu.CompilerParams(
        dimension_semantics=("parallel",),        # shard row tiles across cores (v7x)
        vmem_limit_bytes=vmem_limit_bytes,
    )

    if segment_ids is not None:
        ids = jnp.asarray(segment_ids).reshape(M, 1).astype(jnp.int32)
        out = pl.pallas_call(
            _adapter_seg_kernel,
            out_shape=jax.ShapeDtypeStruct((M, N), out_dtype),
            grid_spec=pltpu.PrefetchScalarGridSpec(
                num_scalar_prefetch=0,
                grid=grid,
                in_specs=[
                    pl.BlockSpec((TM, D), lambda i: (i, 0)),                    # x row tile
                    pl.BlockSpec((INPUT_DIM_MAIN, N), lambda i: (0, 0)),        # resident weight
                    pl.BlockSpec((NUM_SEGMENTS + INPUT_DIM_TAIL, N),
                                 lambda i: (0, 0)),                             # seg+tail table
                    pl.BlockSpec((1, N), lambda i: (0, 0)),                     # f32 bias
                    pl.BlockSpec((TM, 1), lambda i: (i, 0)),                    # segment ids
                ],
                out_specs=pl.BlockSpec((TM, N), lambda i: (i, 0)),
            ),
            compiler_params=compiler_params,
        )(x_flat, w_main, seg_tail_tab, b_row, ids)
    else:
        out = pl.pallas_call(
            _adapter_bias_kernel,
            out_shape=jax.ShapeDtypeStruct((M, N), out_dtype),
            grid_spec=pltpu.PrefetchScalarGridSpec(
                num_scalar_prefetch=0,
                grid=grid,
                in_specs=[
                    pl.BlockSpec((TM, D), lambda i: (i, 0)),                    # x row tile
                    pl.BlockSpec((INPUT_DIM_MAIN, N), lambda i: (0, 0)),        # resident weight
                    pl.BlockSpec((INPUT_DIM_TAIL, N), lambda i: (0, 0)),        # tail columns
                    pl.BlockSpec((1, N), lambda i: (0, 0)),                     # f32 bias
                ],
                out_specs=pl.BlockSpec((TM, N), lambda i: (i, 0)),
            ),
            compiler_params=compiler_params,
        )(x_flat, w_main, w_tail, b_row)

    return out.reshape(B, L, N)


# ---------------------------------------------------------------------------
# Pure-JAX f32 reference (matches the PyTorch module semantics)
# ---------------------------------------------------------------------------
def prefix_adapter_reference(x, weight, bias, segment_emb, segment_ids=None):
    B, L, D = x.shape
    h = x.reshape(B * L, D) @ weight.T + bias
    h = h.reshape(B, L, HIDDEN_DIM)
    if segment_ids is not None:
        h = h + jnp.take(segment_emb, segment_ids, axis=0)
    return h


if __name__ == "__main__":
    key = jax.random.PRNGKey(0)
    k_x, k_w, k_b, k_e, k_s = jax.random.split(key, 5)

    B, L = 2, 8
    x = jax.random.normal(k_x, (B, L, INPUT_DIM), dtype=jnp.float32)
    # deterministic synthetic parameters (nn.Linear / nn.Embedding shapes)
    weight = jax.random.normal(k_w, (HIDDEN_DIM, INPUT_DIM), dtype=jnp.float32) * 0.02
    bias = jax.random.normal(k_b, (HIDDEN_DIM,), dtype=jnp.float32) * 0.02
    segment_emb = jax.random.normal(k_e, (NUM_SEGMENTS, HIDDEN_DIM), dtype=jnp.float32) * 0.02
    segment_ids = jax.random.randint(k_s, (B, L), 0, NUM_SEGMENTS, dtype=jnp.int32)

    # hoisted once: lane-aligned bf16 weight, tail columns, bias row, segment+tail table
    w_main, w_tail, b_row, seg_tail_tab = prepare_adapter_params(weight, bias, segment_emb)

    # with segment ids
    out = prefix_adapter_forward(x, w_main, w_tail, b_row, seg_tail_tab, segment_ids)
    out = jax.block_until_ready(out)
    ref = prefix_adapter_reference(x, weight, bias, segment_emb, segment_ids)
    assert out.shape == (B, L, HIDDEN_DIM)
    # bf16 matmul inputs (f32 accumulation) -> loosened tolerance vs. f32 reference
    assert jnp.allclose(out, ref, atol=3e-2, rtol=3e-2), "mismatch with segment_ids"

    # without segment ids (optional path)
    out2 = prefix_adapter_forward(x, w_main, w_tail, b_row, seg_tail_tab, None)
    out2 = jax.block_until_ready(out2)
    ref2 = prefix_adapter_reference(x, weight, bias, segment_emb, None)
    assert jnp.allclose(out2, ref2, atol=3e-2, rtol=3e-2), "mismatch without segment_ids"

    # variable row count, M not a multiple of 8 (exercises the masked partial tile)
    L3 = 5
    x3 = jax.random.normal(k_x, (B, L3, INPUT_DIM), dtype=jnp.float32)
    seg3 = jax.random.randint(k_s, (B, L3), 0, NUM_SEGMENTS, dtype=jnp.int32)
    out3 = jax.block_until_ready(
        prefix_adapter_forward(x3, w_main, w_tail, b_row, seg_tail_tab, seg3))
    ref3 = prefix_adapter_reference(x3, weight, bias, segment_emb, seg3)
    assert jnp.allclose(out3, ref3, atol=3e-2, rtol=3e-2), "mismatch with odd row count"

    print("KERNEL_OK")
</pallas_src>

<mosaic_0001>
module attributes {stable_mosaic.version = 11 : i64} {
  func.func @_adapter_seg_kernel(%arg0: i32, %arg1: memref<16x770xf32, #tpu.memory_space<vmem>>, %arg2: memref<768x768xbf16, #tpu.memory_space<vmem>>, %arg3: memref<10x768xbf16, #tpu.memory_space<vmem>>, %arg4: memref<1x768xf32, #tpu.memory_space<vmem>>, %arg5: memref<16x1xi32, #tpu.memory_space<vmem>>, %arg6: memref<16x768xf32, #tpu.memory_space<vmem>>) attributes {dimension_semantics = [#tpu.dimension_semantics<parallel>], iteration_bounds = array<i64: 1>, scalar_prefetch = 0 : i64, scratch_operands = 0 : i64, tpu.core_type = #tpu.core_type<tc>, window_params = [{transform_indices = @transform_0, window_bounds = array<i64: 16, 770>}, {pipeline_mode = #tpu.pipeline_mode<synchronous>, transform_indices = @transform_1, window_bounds = array<i64: 768, 768>}, {pipeline_mode = #tpu.pipeline_mode<synchronous>, transform_indices = @transform_2, window_bounds = array<i64: 10, 768>}, {pipeline_mode = #tpu.pipeline_mode<synchronous>, transform_indices = @transform_3, window_bounds = array<i64: 1, 768>}, {transform_indices = @transform_4, window_bounds = array<i64: 16, 1>}, {transform_indices = @transform_5, window_bounds = array<i64: 16, 768>}]} {
    %c0 = arith.constant 0 : index
    %c0_0 = arith.constant 0 : index
    %0 = vector.load %arg1[%c0, %c0_0] : memref<16x770xf32, #tpu.memory_space<vmem>>, vector<16x768xf32>
    %1 = arith.truncf %0 : vector<16x768xf32> to vector<16x768xbf16>
    %c0_1 = arith.constant 0 : index
    %c0_2 = arith.constant 0 : index
    %2 = vector.load %arg2[%c0_1, %c0_2] : memref<768x768xbf16, #tpu.memory_space<vmem>>, vector<768x768xbf16>
    %cst = arith.constant dense<0.000000e+00> : vector<16x768xf32>
    %3 = tpu.matmul %1, %2, %cst {dimension_numbers = #tpu.dot_dimension_numbers<[1], [0], [0], [1], [0, 0, 1, 1], [], []>} : vector<16x768xbf16>, vector<768x768xbf16>, vector<16x768xf32> -> vector<16x768xf32>
    %c0_3 = arith.constant 0 : index
    %c0_4 = arith.constant 0 : index
    %4 = vector.load %arg5[%c0_3, %c0_4] : memref<16x1xi32, #tpu.memory_space<vmem>>, vector<16x1xi32>
    %5 = tpu.iota {dimensions = array<i32: 1>} : vector<16x8xi32>
    %6 = vector.broadcast %4 : vector<16x1xi32> to vector<16x8xi32>
    %7 = arith.cmpi eq, %6, %5 : vector<16x8xi32>
    %8 = arith.extui %7 : vector<16x8xi1> to vector<16x8xi32>
    %9 = arith.sitofp %8 : vector<16x8xi32> to vector<16x8xf32>
    %10 = arith.truncf %9 : vector<16x8xf32> to vector<16x8xbf16>
    %c0_5 = arith.constant 0 : index
    %c768 = arith.constant 768 : index
    %11 = vector.load %arg1[%c0_5, %c768] : memref<16x770xf32, #tpu.memory_space<vmem>>, vector<16x2xf32>
    %12 = arith.truncf %11 : vector<16x2xf32> to vector<16x2xbf16>
    %13 = tpu.concatenate %10, %12 in 1 : vector<16x8xbf16>, vector<16x2xbf16> -> vector<16x10xbf16>
    %c0_6 = arith.constant 0 : index
    %c0_7 = arith.constant 0 : index
    %14 = vector.load %arg3[%c0_6, %c0_7] : memref<10x768xbf16, #tpu.memory_space<vmem>>, vector<10x768xbf16>
    %cst_8 = arith.constant dense<0.000000e+00> : vector<16x768xf32>
    %15 = tpu.matmul %13, %14, %cst_8 {dimension_numbers = #tpu.dot_dimension_numbers<[1], [0], [0], [1], [0, 0, 1, 1], [], []>} : vector<16x10xbf16>, vector<10x768xbf16>, vector<16x768xf32> -> vector<16x768xf32>
    %16 = arith.addf %3, %15 : vector<16x768xf32>
    %c0_9 = arith.constant 0 : index
    %c0_10 = arith.constant 0 : index
    %17 = vector.load %arg4[%c0_9, %c0_10] : memref<1x768xf32, #tpu.memory_space<vmem>>, vector<1x768xf32>
    %18 = vector.broadcast %17 : vector<1x768xf32> to vector<16x768xf32>
    %19 = arith.addf %16, %18 : vector<16x768xf32>
    %c0_11 = arith.constant 0 : index
    %c0_12 = arith.constant 0 : index
    %20 = vector.load %arg6[%c0_11, %c0_12] : memref<16x768xf32, #tpu.memory_space<vmem>>, vector<16x768xf32>
    tpu.vector_store %arg6[%c0_11, %c0_12], %19 {strides = array<i32>} : memref<16x768xf32, #tpu.memory_space<vmem>>, vector<16x768xf32>,
    return
  }
  func.func @transform_0(%arg0: i32) -> (i32, i32) {
    %c0_i32 = arith.constant 0 : i32
    %c0_i32_0 = arith.constant 0 : i32
    return %arg0, %c0_i32 : i32, i32
  }
  func.func @transform_1(%arg0: i32) -> (i32, i32) {
    %c0_i32 = arith.constant 0 : i32
    %c0_i32_0 = arith.constant 0 : i32
    %c0_i32_1 = arith.constant 0 : i32
    return %c0_i32, %c0_i32_0 : i32, i32
  }
  func.func @transform_2(%arg0: i32) -> (i32, i32) {
    %c0_i32 = arith.constant 0 : i32
    %c0_i32_0 = arith.constant 0 : i32
    %c0_i32_1 = arith.constant 0 : i32
    return %c0_i32, %c0_i32_0 : i32, i32
  }
  func.func @transform_3(%arg0: i32) -> (i32, i32) {
    %c0_i32 = arith.constant 0 : i32
    %c0_i32_0 = arith.constant 0 : i32
    %c0_i32_1 = arith.constant 0 : i32
    return %c0_i32, %c0_i32_0 : i32, i32
  }
  func.func @transform_4(%arg0: i32) -> (i32, i32) {
    %c0_i32 = arith.constant 0 : i32
    %c0_i32_0 = arith.constant 0 : i32
    return %arg0, %c0_i32 : i32, i32
  }
  func.func @transform_5(%arg0: i32) -> (i32, i32) {
    %c0_i32 = arith.constant 0 : i32
    %c0_i32_0 = arith.constant 0 : i32
    return %arg0, %c0_i32 : i32, i32
  }
}

</mosaic_0001>

<bundles_post_ra>
// kernel: tpu_custom_call.1
= control target key start
LH: loop header
LB: loop body
LE: loop exit
PB: predicated region body
PF: predicated region fallthrough
CT: control target
= control target key end

     0   :  { %10 = vsyncpa [#allocation3], 0  ;;  %s3588_s0 = inlined_call_operand.hbm [shape: f32[16,770], index: 0, kind: input, shape index: {}]   ;;  %s3589_s1 = inlined_call_operand.hbm [shape: bf16[768,768], index: 1, kind: input, shape index: {}]   ;;  %s3590_s2 = inlined_call_operand.hbm [shape: bf16[10,768], index: 2, kind: input, shape index: {}]   ;;  %s3591_s3 = inlined_call_operand.hbm [shape: f32[1,768], index: 3, kind: input, shape index: {}]   ;;  %s3592_s4 = inlined_call_operand.vmem [shape: s32[16,1], index: 4, kind: input, shape index: {}]   ;;  %s3593_s5 = inlined_call_operand.hbm [shape: f32[16,768], index: 5, kind: output, shape index: {}]  }
   0x1   :  { %11 = vsyncpa [#allocation6], 0 }
   0x2   :  { %12 = vsyncpa [#allocation9], 0 }
   0x3   :  { %13 = vsyncpa [#allocation4], 0  ;;  %s3403_s18 = smov [#allocation5]   ;;  %s3285_s22 = scalar_lea.hbm %s3589_s1, 36864 }
   0x4   :  { %s31_s19 = sshll.u32 %s3403_s18, 4  ;;  %p3286_p0 = scmp.ne.s32.totalorder %s3589_s1, %s3285_s22  ;;  %s32_s19 = int_to_ptr.vmem [resolvable:$true] %s31_s19 }
   0x5   :  { %p3289_p1 = scmp.lt.u32.totalorder %s3285_s22, %s3589_s1 }
   0x7   :  { %p3291_p2 = pnand %p3289_p1, %p3286_p0 }
   0x9   :  { %3294 = shalt.err (!%p3291_p2)
}
   0xa   :  { %s3295_s27 = scalar_lea.vmem %s32_s19, 36864  ;;  %p3300_p4 = scmp.lt.s32.totalorder %s32_s19, %s32_s19 }
   0xb   :  { %p3296_p3 = scmp.ne.s32.totalorder %s32_s19, %s3295_s27  ;;  %p3301_p5 = scmp.lt.s32.totalorder %s3295_s27, %s3295_s27 }
   0xd   :  { %p3302_p6 = por %p3301_p5, %p3300_p4 }
   0xf   :  { %p3303_p7 = pnand %p3302_p6, %p3296_p3 }
  0x11   :  { %3306 = shalt.err (!%p3303_p7)
}
  0x12   :  { %s3404_s28 = smov 384   ;;  %s3405_s29 = smov 24  }
  0x13   :  { %37 = dma.hbm_to_vmem [thread:$0]  %s3589_s1, 36864, %s32_s19, [#allocation6], %s3404_s28, %s3404_s28, %s3405_s29  }
  0x14   :  { %s3406_s7 = smov [#allocation2]   ;;  %s3307_s11 = scalar_lea.hbm %s3588_s0, 1792 }
  0x15   :  { %s19_s8 = sshll.u32 %s3406_s7, 4  ;;  %p3308_p8 = scmp.ne.s32.totalorder %s3588_s0, %s3307_s11  ;;  %s20_s8 = int_to_ptr.vmem [resolvable:$true] %s19_s8 }
  0x16   :  { %p3311_p9 = scmp.lt.u32.totalorder %s3307_s11, %s3588_s0 }
  0x18   :  { %p3313_p10 = pnand %p3311_p9, %p3308_p8 }
  0x1a   :  { %3316 = shalt.err (!%p3313_p10)
}
  0x1b   :  { %s3317_s16 = scalar_lea.vmem %s20_s8, 1792  ;;  %p3322_p12 = scmp.lt.s32.totalorder %s20_s8, %s20_s8 }
  0x1c   :  { %p3318_p11 = scmp.ne.s32.totalorder %s20_s8, %s3317_s16  ;;  %p3323_p13 = scmp.lt.s32.totalorder %s3317_s16, %s3317_s16 }
  0x1e   :  { %p3324_p0 = por %p3323_p13, %p3322_p12 }
  0x20   :  { %p3325_p1 = pnand %p3324_p0, %p3318_p11 }
  0x22   :  { %3328 = shalt.err (!%p3325_p1)
}
  0x23   :  { %s3407_s1 = smov 896   ;;  %s3408_s17 = smov 56  }
  0x24   :  { %25 = dma.hbm_to_vmem [thread:$0]  %s3588_s0, 1792, %s20_s8, [#allocation3], %s3407_s1, %s3407_s1, %s3408_s17  }
  0x25   :  { %s3409_s20 = smov [#allocation7]   ;;  %s3410_s22 = smov [#allocation8]  }
  0x26   :  { %s43_s21 = sshll.u32 %s3409_s20, 4  ;;  %s56_s23 = sshll.u32 %s3410_s22, 4  ;;  %s44_s21 = int_to_ptr.vmem [resolvable:$true] %s43_s21  ;;  %s57_s23 = int_to_ptr.vmem [resolvable:$true] %s56_s23 }
  0x27   :  { %s3329_s26 = scalar_lea.hbm %s3590_s2, 768 }
  0x28   :  { %p3330_p2 = scmp.ne.s32.totalorder %s3590_s2, %s3329_s26  ;;  %p3333_p3 = scmp.lt.u32.totalorder %s3329_s26, %s3590_s2 }
  0x2a   :  { %p3335_p4 = pnand %p3333_p3, %p3330_p2 }
  0x2c   :  { %3338 = shalt.err (!%p3335_p4)
}
  0x2d   :  { %s3339_s0 = scalar_lea.vmem %s44_s21, 768  ;;  %p3344_p6 = scmp.lt.s32.totalorder %s44_s21, %s44_s21 }
  0x2e   :  { %p3340_p5 = scmp.ne.s32.totalorder %s44_s21, %s3339_s0  ;;  %p3345_p7 = scmp.lt.s32.totalorder %s3339_s0, %s3339_s0 }
  0x30   :  { %p3346_p8 = por %p3345_p7, %p3344_p6 }
  0x32   :  { %p3347_p9 = pnand %p3346_p8, %p3340_p5 }
  0x34   :  { %3350 = shalt.err (!%p3347_p9)
}
  0x35   :  { %49 = dma.hbm_to_vmem [thread:$0]  %s3590_s2, 768, %s44_s21, [#allocation6], %s3404_s28, %s3404_s28, %s3405_s29  }
  0x36   :  { %s3351_s12 = scalar_lea.hbm %s3591_s3, 96 }
  0x37   :  { %p3352_p10 = scmp.ne.s32.totalorder %s3591_s3, %s3351_s12  ;;  %p3355_p11 = scmp.lt.u32.totalorder %s3351_s12, %s3591_s3 }
  0x39   :  { %p3357_p12 = pnand %p3355_p11, %p3352_p10 }
  0x3b   :  { %3360 = shalt.err (!%p3357_p12)
}
  0x3c   :  { %s3361_s1 = scalar_lea.vmem %s57_s23, 96  ;;  %p3366_p0 = scmp.lt.s32.totalorder %s57_s23, %s57_s23 }
  0x3d   :  { %p3362_p13 = scmp.ne.s32.totalorder %s57_s23, %s3361_s1  ;;  %p3367_p1 = scmp.lt.s32.totalorder %s3361_s1, %s3361_s1 }
  0x3f   :  { %p3368_p2 = por %p3367_p1, %p3366_p0 }
  0x41   :  { %p3369_p3 = pnand %p3368_p2, %p3362_p13 }
  0x43   :  { %3372 = shalt.err (!%p3369_p3)
}
  0x44   :  { %59 = dma.hbm_to_vmem [thread:$0]  %s3591_s3, 96, %s57_s23, [#allocation9]  }
  0x45   :  { %3395 = dma.done.wait [#allocation3], 1792  }
  0x46   :  { %3396 = vsyncadd [#allocation3], 4294965504 }
  0x47   :  { %3397 = dma.done.wait [#allocation6], 37632  }
  0x48   :  { %3398 = vsyncadd [#allocation6], 4294929664 }
  0x49   :  { %3399 = dma.done.wait [#allocation9], 96  }
  0x4a   :  { %3400 = vsyncadd [#allocation9], 4294967200  ;;  %v3411_v0 = vmov 0   ;;  %v381_v1 = vld [vmem:[%s3592_s4] sm:$0xff]  ;;  %v2844_v2 = vld [vmem:[#allocation5 + $0x304] ss:$24 sps:$4 sm:$0xff]  }
  0x4b   :  { %2843 = vset.pattern.permute.xlu0 %v3411_v0  ;;  %492 = vmatprep.mubr.bf16.mxu1 %v3411_v0  ;;  %v2846_v3 = vld [vmem:[#allocation5 + $0x300] ss:$24 sps:$4 sm:$0xff]   ;;  %v2847_v5 = vld [vmem:[#allocation5 + $0x334] ss:$24 sps:$4 sm:$0xff]   ;;  %v2849_v6 = vld [vmem:[#allocation5 + $0x330] ss:$24 sps:$4 sm:$0xff]  }
  0x4c   :  { %386 = vperm.xlu0 %2843, %v381_v1   ;;  %v382_v4 = vld [vmem:[%s3592_s4 + $0x8] sm:$0xff]  ;;  %2072 = vmatprep.subr.bf16.mxu0 %v2844_v2  ;;  %v398_v8 = vld [vmem:[#allocation2 + $0x30] sm:$0xff]  ;;  %v2853_v12 = vld [vmem:[#allocation5 + $0x394] ss:$24 sps:$4 sm:$0xff]   ;;  %s3412_s19 = smov 8   ;;  %vm441_vm0 = vcmask 1044480  }
  0x4d   :  { %2073 = vmatpush1.bf16.msra.mxu0 %v2846_v3  ;;  %v2850_v7 = vld [vmem:[#allocation5 + $0x364] ss:$24 sps:$4 sm:$0xff]   ;;  %v2852_v10 = vld [vmem:[#allocation5 + $0x360] ss:$24 sps:$4 sm:$0xff]   ;;  %v2855_v13 = vld [vmem:[#allocation5 + $0x390] ss:$24 sps:$4 sm:$0xff]  }
  0x4e   :  { %2074 = vmatprep.subr.bf16.mxu0 %v2847_v5  ;;  %v399_v9 = vld [vmem:[#allocation2 + $0x68] sm:$0xff]  ;;  %v2859_v16 = vld [vmem:[#allocation5 + $0x3f4] ss:$24 sps:$4 sm:$0xff]   ;;  %v2861_v17 = vld [vmem:[#allocation5 + $0x3f0] ss:$24 sps:$4 sm:$0xff]   ;;  %vm404_vm3 = vcmask 64512  }
  0x4f   :  { %v400_v11 = vpack.c.bf16 %v399_v9, %v398_v8  ;;  %v2856_v14 = vld [vmem:[#allocation5 + $0x3c4] ss:$24 sps:$4 sm:$0xff]   ;;  %v2858_v15 = vld [vmem:[#allocation5 + $0x3c0] ss:$24 sps:$4 sm:$0xff]   ;;  %v78_v19 = vld [vmem:[#allocation2 + $0x18] sm:$0xff]  ;;  %vm438_vm4 = vcmask 80896  }
  0x50   :  { %389 = vperm.xlu0 %2843, %v382_v4   ;;  %v2862_v18 = vld [vmem:[#allocation5 + $0x424] ss:$24 sps:$4 sm:$0xff]   ;;  %v2864_v21 = vld [vmem:[#allocation5 + $0x420] ss:$24 sps:$4 sm:$0xff]   ;;  %v2865_v23 = vld [vmem:[#allocation5 + $0x454] ss:$24 sps:$4 sm:$0xff]  }
  0x51   :  { %2075 = vmatpush1.bf16.msra.mxu0 %v2849_v6  ;;  %402 = vrot.lane.b32.xlu1 %v400_v11, %s3412_s19  ;;  %v84_v20 = vld [vmem:[#allocation2 + $0x50] sm:$0xff]  ;;  %v2867_v24 = vld [vmem:[#allocation5 + $0x450] ss:$24 sps:$4 sm:$0xff]   ;;  %v2871_v27 = vld [vmem:[#allocation5 + $0x4b4] ss:$24 sps:$4 sm:$0xff]   ;;  %s3414_s4 = smov [#allocation10]  }
  0x52   :  { %2076 = vmatprep.subr.bf16.mxu0 %v2850_v7  ;;  %v3509_v22 = vpack.c.bf16 %v84_v20, %v78_v19  ;;  %v2868_v25 = vld [vmem:[#allocation5 + $0x484] ss:$24 sps:$4 sm:$0xff]   ;;  %v2870_v26 = vld [vmem:[#allocation5 + $0x480] ss:$24 sps:$4 sm:$0xff]   ;;  %v2873_v28 = vld [vmem:[#allocation5 + $0x4b0] ss:$24 sps:$4 sm:$0xff]   ;;  %v383_v20 = vlaneseq }
  0x53   :  { %v2874_v29 = vld [vmem:[#allocation5 + $0x4e4] ss:$24 sps:$4 sm:$0xff]   ;;  %v2876_v30 = vld [vmem:[#allocation5 + $0x4e0] ss:$24 sps:$4 sm:$0xff]   ;;  %v2877_v31 = vld [vmem:[#allocation5 + $0x514] ss:$24 sps:$4 sm:$0xff]  }
  0x54   :  { %2104 = vmatprep.mubr.bf16.mxu0 %v3509_v22  ;;  %v2879_v32 = vld [vmem:[#allocation5 + $0x510] ss:$24 sps:$4 sm:$0xff]   ;;  %v2880_v33 = vld [vmem:[#allocation5 + $0x544] ss:$24 sps:$4 sm:$0xff]   ;;  %v2882_v34 = vld [vmem:[#allocation5 + $0x540] ss:$24 sps:$4 sm:$0xff]  }
  0x55   :  { %2077 = vmatpush1.bf16.msra.mxu0 %v2852_v10  ;;  %v2883_v35 = vld [vmem:[#allocation5 + $0x574] ss:$24 sps:$4 sm:$0xff]   ;;  %v2943_v36 = vld [vmem:[#allocation7 + $0x4] ss:$24 sps:$4 sm:$0x1f]   ;;  %s2477_s20 = sshll.u32 %s3414_s4, 4  ;;  %s2478_s20 = int_to_ptr.vmem [resolvable:$true] %s2477_s20 }
  0x56   :  { %2078 = vmatprep.subr.bf16.mxu0 %v2853_v12  ;;  %v2945_v37 = vld [vmem:[#allocation7] ss:$24 sps:$4 sm:$0x1f]   ;;  %2499 = vmatprep.subr.msk.bf16.mxu1 %vm441_vm0, %v2943_v36  ;;  %v2949_v39 = vld [vmem:[#allocation7 + $0xc] ss:$24 sps:$4 sm:$0x1f]   ;;  %p3378_p5 = scmp.lt.s32.totalorder %s2478_s20, %s2478_s20 }
  0x57   :  { %v443_v38 = vsel %vm441_vm0, %v2945_v37, 0  ;;  %v2885_v40 = vld [vmem:[#allocation5 + $0x570] ss:$24 sps:$4 sm:$0xff]   ;;  %v2886_v41 = vld [vmem:[#allocation5 + $0x5a4] ss:$24 sps:$4 sm:$0xff]   ;;  %v3413_v37 = vmov 0.0  }
  0x58   :  { %461 = vmatpush1.bf16.msra.mxu1 %v443_v38  ;;  %v2888_v42 = vld [vmem:[#allocation5 + $0x5a0] ss:$24 sps:$4 sm:$0xff]   ;;  %v2889_v43 = vld [vmem:[#allocation5 + $0x5d4] ss:$24 sps:$4 sm:$0xff]   ;;  %v2891_v44 = vld [vmem:[#allocation5 + $0x5d0] ss:$24 sps:$4 sm:$0xff]  }
  0x59   :  { %2079 = vmatpush1.bf16.msra.mxu0 %v2855_v13  ;;  %2501 = vmatprep.subr.msk.bf16.mxu1 %vm441_vm0, %v2949_v39  ;;  %v2894_v45 = vld [vmem:[#allocation5 + $0x604] ss:$24 sps:$4 sm:$0xff]   ;;  %v86_v49 = vld [vmem:[#allocation2 + $0x60] sm:$0xff]  ;;  %v2892_v51 = vld [vmem:[#allocation5 + $0x600] ss:$24 sps:$4 sm:$0xff]   ;;  %s3373_s21 = scalar_lea.vmem %s2478_s20, 1536 }
  0x5a   :  { %2080 = vmatprep.subr.bf16.mxu0 %v2856_v14  ;;  %v77_v46 = vld [vmem:[#allocation2 + $0x10] sm:$0xff]  ;;  %v83_v47 = vld [vmem:[#allocation2 + $0x48] sm:$0xff]  ;;  %v2897_v53 = vld [vmem:[#allocation5 + $0x634] ss:$24 sps:$4 sm:$0xff]   ;;  %p3374_p4 = scmp.ne.s32.totalorder %s2478_s20, %s3373_s21  ;;  %p3379_p6 = scmp.lt.s32.totalorder %s3373_s21, %s3373_s21 }
  0x5b   :  { %v80_v48 = vld [vmem:[#allocation2 + $0x28] sm:$0xff]  ;;  %v3515_v50 = vpack.c.bf16 %v83_v47, %v77_v46  ;;  %v2895_v54 = vld [vmem:[#allocation5 + $0x630] ss:$24 sps:$4 sm:$0xff]   ;;  %v2903_v57 = vld [vmem:[#allocation5 + $0x694] ss:$24 sps:$4 sm:$0xff]  }
  0x5c   :  { %v3517_v52 = vpack.c.bf16 %v86_v49, %v80_v48  ;;  %v2900_v55 = vld [vmem:[#allocation5 + $0x664] ss:$24 sps:$4 sm:$0xff]   ;;  %v2898_v56 = vld [vmem:[#allocation5 + $0x660] ss:$24 sps:$4 sm:$0xff]   ;;  %v2901_v58 = vld [vmem:[#allocation5 + $0x690] ss:$24 sps:$4 sm:$0xff]   ;;  %p3380_p7 = por %p3379_p6, %p3378_p5 }
  0x5d   :  { %2081 = vmatpush1.bf16.msra.mxu0 %v2858_v15  ;;  %v2906_v59 = vld [vmem:[#allocation5 + $0x6c4] ss:$24 sps:$4 sm:$0xff]   ;;  %v2904_v60 = vld [vmem:[#allocation5 + $0x6c0] ss:$24 sps:$4 sm:$0xff]   ;;  %v2909_v61 = vld [vmem:[#allocation5 + $0x6f4] ss:$24 sps:$4 sm:$0xff]  }
  0x5e   :  { %2082 = vmatprep.subr.bf16.mxu0 %v2859_v16  ;;  %v2907_v62 = vld [vmem:[#allocation5 + $0x6f0] ss:$24 sps:$4 sm:$0xff]   ;;  %v2912_v63 = vld [vmem:[#allocation5 + $0x724] ss:$24 sps:$4 sm:$0xff]   ;;  %v2910_v1 = vld [vmem:[#allocation5 + $0x720] ss:$24 sps:$4 sm:$0xff]   ;;  %p3381_p8 = pnand %p3380_p7, %p3374_p4 }
  0x5f   :  { %v2915_v2 = vld [vmem:[#allocation5 + $0x754] ss:$24 sps:$4 sm:$0xff]   ;;  %v2913_v3 = vld [vmem:[#allocation5 + $0x750] ss:$24 sps:$4 sm:$0xff]   ;;  %v2918_v4 = vld [vmem:[#allocation5 + $0x784] ss:$24 sps:$4 sm:$0xff]  }
  0x60   :  { %v2916_v5 = vld [vmem:[#allocation5 + $0x780] ss:$24 sps:$4 sm:$0xff]   ;;  %v2921_v6 = vld [vmem:[#allocation5 + $0x7b4] ss:$24 sps:$4 sm:$0xff]   ;;  %v2919_v7 = vld [vmem:[#allocation5 + $0x7b0] ss:$24 sps:$4 sm:$0xff]  }
  0x61   :  { %2083 = vmatpush1.bf16.msra.mxu0 %v2861_v17  ;;  %v2924_v8 = vld [vmem:[#allocation5 + $0x7e4] ss:$24 sps:$4 sm:$0xff]   ;;  %v2922_v9 = vld [vmem:[#allocation5 + $0x7e0] ss:$24 sps:$4 sm:$0xff]   ;;  %v2927_v10 = vld [vmem:[#allocation5 + $0x814] ss:$24 sps:$4 sm:$0xff]  }
  0x62   :  { %2084 = vmatprep.subr.bf16.mxu0 %v2862_v18  ;;  %v2925_v11 = vld [vmem:[#allocation5 + $0x810] ss:$24 sps:$4 sm:$0xff]   ;;  %v2930_v12 = vld [vmem:[#allocation5 + $0x844] ss:$24 sps:$4 sm:$0xff]   ;;  %v2928_v13 = vld [vmem:[#allocation5 + $0x840] ss:$24 sps:$4 sm:$0xff]  }
  0x63   :  { %v2933_v14 = vld [vmem:[#allocation5 + $0x874] ss:$24 sps:$4 sm:$0xff]   ;;  %v2931_v15 = vld [vmem:[#allocation5 + $0x870] ss:$24 sps:$4 sm:$0xff]   ;;  %v2936_v16 = vld [vmem:[#allocation5 + $0x8a4] ss:$24 sps:$4 sm:$0xff]  }
  0x64   :  { %v2934_v17 = vld [vmem:[#allocation5 + $0x8a0] ss:$24 sps:$4 sm:$0xff]   ;;  %v2939_v18 = vld [vmem:[#allocation5 + $0x8d4] ss:$24 sps:$4 sm:$0xff]   ;;  %v2937_v19 = vld [vmem:[#allocation5 + $0x8d0] ss:$24 sps:$4 sm:$0xff]  }
  0x65   :  { %2085 = vmatpush1.bf16.msra.mxu0 %v2864_v21  ;;  %v2942_v21 = vld [vmem:[#allocation5 + $0x14] ss:$24 sps:$4 sm:$0xff]   ;;  %v2957_v46 = vld [vmem:[#allocation5 + $0xa4] ss:$24 sps:$4 sm:$0xff]   ;;  %v2955_v47 = vld [vmem:[#allocation5 + $0xa0] ss:$24 sps:$4 sm:$0xff]  }
  0x66   :  { %2086 = vmatprep.subr.bf16.mxu0 %v2865_v23  ;;  %v79_v23 = vld [vmem:[#allocation2 + $0x20] sm:$0xff] }
  0x67   :  { %v2954_v36 = vld [vmem:[#allocation5 + $0x74] ss:$24 sps:$4 sm:$0xff]   ;;  %v2960_v48 = vld [vmem:[#allocation7 + $0x10] ss:$24 sps:$4 sm:$0x1f]  }
  0x68   :  { %v2963_v49 = vld [vmem:[#allocation5 + $0xd4] ss:$24 sps:$4 sm:$0xff]  }
  0x69   :  { %2087 = vmatpush1.bf16.msra.mxu0 %v2867_v24  ;;  %v85_v24 = vld [vmem:[#allocation2 + $0x58] sm:$0xff] }
  0x6a   :  { %2088 = vmatprep.subr.bf16.mxu0 %v2868_v25  ;;  %v76_v25 = vld [vmem:[#allocation2 + $0x8] sm:$0xff] }
  0x6d   :  { %2089 = vmatpush1.bf16.msra.mxu0 %v2870_v26  ;;  %v82_v26 = vld [vmem:[#allocation2 + $0x40] sm:$0xff] }
  0x6e   :  { %2090 = vmatprep.subr.bf16.mxu0 %v2871_v27  ;;  %v384_v27 = vand.u32 127, %v383_v20 }
  0x71   :  { %2091 = vmatpush1.bf16.msra.mxu0 %v2873_v28  ;;  %v3522_v28 = vpack.c.bf16 %v85_v24, %v79_v23  ;;  %v3014_v23 = vld [vmem:[#allocation5 + $0x284] ss:$24 sps:$4 sm:$0xff]   ;;  %v3009_v24 = vld [vmem:[#allocation5 + $0x150] ss:$24 sps:$4 sm:$0xff]  }
  0x72   :  { %2092 = vmatprep.subr.bf16.mxu0 %v2874_v29 }
  0x75   :  { %2093 = vmatpush1.bf16.msra.mxu0 %v2876_v30  ;;  %v2940_v30 = vld [vmem:[#allocation5 + $0x10] ss:$24 sps:$4 sm:$0xff]  }
  0x76   :  { %2094 = vmatprep.subr.bf16.mxu0 %v2877_v31  ;;  %v3524_v31 = vpack.c.bf16 %v82_v26, %v76_v25  ;;  %v3012_v25 = vld [vmem:[#allocation5 + $0x280] ss:$24 sps:$4 sm:$0xff]   ;;  %v3017_v26 = vld [vmem:[#allocation5 + $0x184] ss:$24 sps:$4 sm:$0xff]  }
  0x79   :  { %2095 = vmatpush1.bf16.msra.mxu0 %v2879_v32  ;;  %v2948_v32 = vld [vmem:[#allocation5 + $0x44] ss:$24 sps:$4 sm:$0xff]  }
  0x7a   :  { %2096 = vmatprep.subr.bf16.mxu0 %v2880_v33  ;;  %v2946_v33 = vld [vmem:[#allocation5 + $0x40] ss:$24 sps:$4 sm:$0xff]  }
  0x7d   :  { %2097 = vmatpush1.bf16.msra.mxu0 %v2882_v34 }
  0x7e   :  { %2098 = vmatprep.subr.bf16.mxu0 %v2883_v35  ;;  %v2951_v35 = vld [vmem:[#allocation7 + $0x8] ss:$24 sps:$4 sm:$0x1f]  }
  0x81   :  { %2099 = vmatpush1.bf16.msra.mxu0 %v2885_v40 }
  0x82   :  { %2100 = vmatprep.subr.bf16.mxu0 %v2886_v41  ;;  %v2952_v41 = vld [vmem:[#allocation5 + $0x70] ss:$24 sps:$4 sm:$0xff]  }
  0x85   :  { %2101 = vmatpush1.bf16.msra.mxu0 %v2888_v42 }
  0x86   :  { %2102 = vmatprep.subr.bf16.mxu0 %v2889_v43  ;;  %v449_v43 = vsel %vm441_vm0, %v2951_v35, 0  ;;  %v3024_v35 = vld [vmem:[#allocation5 + $0x2e0] ss:$24 sps:$4 sm:$0xff]  }
  0x89   :  { %2103 = vmatpush1.bf16.msra.mxu0 %v2891_v44  ;;  %v2958_v44 = vld [vmem:[#allocation7 + $0x14] ss:$24 sps:$4 sm:$0x1f]  }
  0x8a   :  { %2115 = vmatprep.subr.bf16.mxu0 %v2894_v45 }
  0x8c   :  { %2105 = vmatmul.mubr.bf16.vlgmr.msra.gmra.mrb[0].mxu0 %v3515_v50 }
  0x8d   :  { %2116 = vmatpush1.bf16.msra.mxu0 %v2892_v51  ;;  %2147 = vmatprep.mubr.bf16.mxu0 %v3517_v52  ;;  %v455_v51 = vsel %vm441_vm0, %v2960_v48, 0  ;;  %v3044_v48 = vld [vmem:[#allocation5 + $0x374] ss:$24 sps:$4 sm:$0xff]  }
  0x8e   :  { %2117 = vmatprep.subr.bf16.mxu0 %v2897_v53  ;;  %v2961_v53 = vld [vmem:[#allocation5 + $0xd0] ss:$24 sps:$4 sm:$0xff]  }
  0x91   :  { %2118 = vmatpush1.bf16.msra.mxu0 %v2895_v54  ;;  %v2969_v54 = vld [vmem:[#allocation5 + $0x4] ss:$24 sps:$4 sm:$0xff]  }
  0x92   :  { %2119 = vmatprep.subr.bf16.mxu0 %v2900_v55  ;;  %v2966_v55 = vld [vmem:[#allocation5 + $0x104] ss:$24 sps:$4 sm:$0xff]  }
  0x95   :  { %2120 = vmatpush1.bf16.msra.mxu0 %v2898_v56  ;;  %v2964_v56 = vld [vmem:[#allocation5 + $0x100] ss:$24 sps:$4 sm:$0xff]  }
  0x96   :  { %2121 = vmatprep.subr.bf16.mxu0 %v2903_v57  ;;  %v2972_v57 = vld [vmem:[#allocation5 + $0x134] ss:$24 sps:$4 sm:$0xff]  }
  0x99   :  { %2122 = vmatpush1.bf16.msra.mxu0 %v2901_v58  ;;  %v2967_v58 = vld [vmem:[#allocation5] ss:$24 sps:$4 sm:$0xff]  }
  0x9a   :  { %2123 = vmatprep.subr.bf16.mxu0 %v2906_v59  ;;  %v2970_v59 = vld [vmem:[#allocation5 + $0x130] ss:$24 sps:$4 sm:$0xff]  }
  0x9d   :  { %2124 = vmatpush1.bf16.msra.mxu0 %v2904_v60  ;;  %v2975_v60 = vld [vmem:[#allocation5 + $0x34] ss:$24 sps:$4 sm:$0xff]  }
  0x9e   :  { %2125 = vmatprep.subr.bf16.mxu0 %v2909_v61  ;;  %v2978_v61 = vld [vmem:[#allocation5 + $0x164] ss:$24 sps:$4 sm:$0xff]  }
  0xa1   :  { %2126 = vmatpush1.bf16.msra.mxu0 %v2907_v62  ;;  %v2973_v62 = vld [vmem:[#allocation5 + $0x30] ss:$24 sps:$4 sm:$0xff]  }
  0xa2   :  { %2127 = vmatprep.subr.bf16.mxu0 %v2912_v63  ;;  %v2981_v63 = vld [vmem:[#allocation5 + $0x64] ss:$24 sps:$4 sm:$0xff]  }
  0xa5   :  { %2128 = vmatpush1.bf16.msra.mxu0 %v2910_v1  ;;  %v2984_v1 = vld [vmem:[#allocation5 + $0x194] ss:$24 sps:$4 sm:$0xff]  }
  0xa6   :  { %2129 = vmatprep.subr.bf16.mxu0 %v2915_v2  ;;  %v2979_v2 = vld [vmem:[#allocation5 + $0x60] ss:$24 sps:$4 sm:$0xff]  }
  0xa9   :  { %2130 = vmatpush1.bf16.msra.mxu0 %v2913_v3  ;;  %v2982_v3 = vld [vmem:[#allocation5 + $0x190] ss:$24 sps:$4 sm:$0xff]  }
  0xaa   :  { %2131 = vmatprep.subr.bf16.mxu0 %v2918_v4  ;;  %v2987_v4 = vld [vmem:[#allocation5 + $0x94] ss:$24 sps:$4 sm:$0xff]  }
  0xad   :  { %2132 = vmatpush1.bf16.msra.mxu0 %v2916_v5  ;;  %v2990_v5 = vld [vmem:[#allocation5 + $0x1c4] ss:$24 sps:$4 sm:$0xff]  }
  0xae   :  { %2133 = vmatprep.subr.bf16.mxu0 %v2921_v6  ;;  %v2985_v6 = vld [vmem:[#allocation5 + $0x90] ss:$24 sps:$4 sm:$0xff]  }
  0xb1   :  { %2134 = vmatpush1.bf16.msra.mxu0 %v2919_v7  ;;  %v2988_v7 = vld [vmem:[#allocation5 + $0x1c0] ss:$24 sps:$4 sm:$0xff]  }
  0xb2   :  { %2135 = vmatprep.subr.bf16.mxu0 %v2924_v8  ;;  %v2993_v8 = vld [vmem:[#allocation5 + $0xc4] ss:$24 sps:$4 sm:$0xff]  }
  0xb5   :  { %2136 = vmatpush1.bf16.msra.mxu0 %v2922_v9  ;;  %v2996_v9 = vld [vmem:[#allocation5 + $0x1f4] ss:$24 sps:$4 sm:$0xff]  }
  0xb6   :  { %2137 = vmatprep.subr.bf16.mxu0 %v2927_v10  ;;  %v2991_v10 = vld [vmem:[#allocation5 + $0xc0] ss:$24 sps:$4 sm:$0xff]  }
  0xb9   :  { %2138 = vmatpush1.bf16.msra.mxu0 %v2925_v11  ;;  %v2994_v11 = vld [vmem:[#allocation5 + $0x1f0] ss:$24 sps:$4 sm:$0xff]  }
  0xba   :  { %2139 = vmatprep.subr.bf16.mxu0 %v2930_v12  ;;  %v2999_v12 = vld [vmem:[#allocation5 + $0xf4] ss:$24 sps:$4 sm:$0xff]  }
  0xbd   :  { %2140 = vmatpush1.bf16.msra.mxu0 %v2928_v13  ;;  %v3002_v13 = vld [vmem:[#allocation5 + $0x224] ss:$24 sps:$4 sm:$0xff]  }
  0xbe   :  { %2141 = vmatprep.subr.bf16.mxu0 %v2933_v14  ;;  %v2997_v14 = vld [vmem:[#allocation5 + $0xf0] ss:$24 sps:$4 sm:$0xff]  }
  0xc1   :  { %2142 = vmatpush1.bf16.msra.mxu0 %v2931_v15  ;;  %v3000_v15 = vld [vmem:[#allocation5 + $0x220] ss:$24 sps:$4 sm:$0xff]  }
  0xc2   :  { %2143 = vmatprep.subr.bf16.mxu0 %v2936_v16  ;;  %v3005_v16 = vld [vmem:[#allocation5 + $0x124] ss:$24 sps:$4 sm:$0xff]  }
  0xc3   :  { %v403_v40 = vpop.permute.xlu1 %402 }
  0xc5   :  { %2144 = vmatpush1.bf16.msra.mxu0 %v2934_v17  ;;  %v3008_v17 = vld [vmem:[#allocation5 + $0x254] ss:$24 sps:$4 sm:$0xff]  }
  0xc6   :  { %2145 = vmatprep.subr.bf16.mxu0 %v2939_v18  ;;  %v3003_v18 = vld [vmem:[#allocation5 + $0x120] ss:$24 sps:$4 sm:$0xff]  }
  0xc9   :  { %2146 = vmatpush1.bf16.msra.mxu0 %v2937_v19  ;;  %v3006_v19 = vld [vmem:[#allocation5 + $0x250] ss:$24 sps:$4 sm:$0xff]  }
  0xca   :  { %2287 = vmatprep.subr.bf16.mxu0 %v2942_v21  ;;  %v3011_v21 = vld [vmem:[#allocation5 + $0x154] ss:$24 sps:$4 sm:$0xff]  }
  0xcb   :  { %v387_v29 = vpop.permute.xlu0 %386 }
  0xcc   :  { %vm391_vm1 = vcmp.eq.s32.totalorder %v387_v29, %v384_v27  ;;  %2148 = vmatmul.mubr.bf16.vlgmr.msra.gmra.mrb[0].mxu0 %v3522_v28  ;;  %v3015_v29 = vld [vmem:[#allocation5 + $0x180] ss:$24 sps:$4 sm:$0xff]  }
  0xcd   :  { %2288 = vmatpush1.bf16.msra.mxu0 %v2940_v30  ;;  %2319 = vmatprep.mubr.bf16.mxu0 %v3524_v31  ;;  %v2491_v38 = vsel %vm391_vm1, 1.0, %v3413_v37  ;;  %v3018_v30 = vld [vmem:[#allocation5 + $0x2b0] ss:$24 sps:$4 sm:$0xff]  }
  0xce   :  { %2289 = vmatprep.subr.bf16.mxu0 %v2948_v32  ;;  %v3023_v32 = vld [vmem:[#allocation5 + $0x1b4] ss:$24 sps:$4 sm:$0xff]  }
  0xcf   :  { %v390_v34 = vpop.permute.xlu0 %389 }
  0xd0   :  { %vm392_vm2 = vcmp.eq.s32.totalorder %v390_v34, %v384_v27  ;;  %v3020_v27 = vld [vmem:[#allocation5 + $0x2b4] ss:$24 sps:$4 sm:$0xff]   ;;  %v3021_v34 = vld [vmem:[#allocation5 + $0x1b0] ss:$24 sps:$4 sm:$0xff]  }
  0xd1   :  { %v2492_v39 = vsel %vm392_vm2, 1.0, %v3413_v37  ;;  %2290 = vmatpush1.bf16.msra.mxu0 %v2946_v33  ;;  %v3026_v33 = vld [vmem:[#allocation5 + $0x2e4] ss:$24 sps:$4 sm:$0xff]   ;;  %v75_v37 = vld [vmem:[#allocation2] sm:$0xff] }
  0xd2   :  { %v397_v42 = vpack.c.bf16 %v2492_v39, %v2491_v38  ;;  %2291 = vmatprep.subr.bf16.mxu0 %v2954_v36  ;;  %v3029_v36 = vld [vmem:[#allocation5 + $0x1e4] ss:$24 sps:$4 sm:$0xff]   ;;  %v81_v38 = vld [vmem:[#allocation2 + $0x38] sm:$0xff] }
  0xd3   :  { %v3032_v39 = vld [vmem:[#allocation5 + $0x314] ss:$24 sps:$4 sm:$0xff]  }
  0xd4   :  { %v407_v45 = vsel %vm404_vm3, %v397_v42, %v403_v40  ;;  %v3027_v40 = vld [vmem:[#allocation5 + $0x1e0] ss:$24 sps:$4 sm:$0xff]   ;;  %v3030_v42 = vld [vmem:[#allocation5 + $0x310] ss:$24 sps:$4 sm:$0xff]  }
  0xd5   :  { %2500 = vmatmul.mubr.msk.bf16.vlgmr.msra.gmra.mrb[0].mxu1 %vm438_vm4, %v407_v45  ;;  %2292 = vmatpush1.bf16.msra.mxu0 %v2952_v41  ;;  %v3537_v41 = vpack.c.bf16 %v81_v38, %v75_v37  ;;  %v3116_v37 = vld [vmem:[#allocation5 + $0x5b4] ss:$24 sps:$4 sm:$0xff]   ;;  %v3111_v38 = vld [vmem:[#allocation5 + $0x188] ss:$24 sps:$4 sm:$0xff]  }
  0xd6   :  { %504 = vmatpush1.bf16.msra.mxu1 %v449_v43  ;;  %535 = vmatprep.mubr.bf16.mxu1 %v3411_v0  ;;  %v3035_v43 = vld [vmem:[#allocation5 + $0x214] ss:$24 sps:$4 sm:$0xff]  }
  0xd7   :  { %2503 = vmatprep.subr.msk.bf16.mxu1 %vm441_vm0, %v2958_v44  ;;  %2293 = vmatprep.subr.bf16.mxu0 %v2957_v46  ;;  %v3038_v44 = vld [vmem:[#allocation5 + $0x344] ss:$24 sps:$4 sm:$0xff]   ;;  %v3036_v46 = vld [vmem:[#allocation5 + $0x340] ss:$24 sps:$4 sm:$0xff]  }
  0xd9   :  { %2294 = vmatpush1.bf16.msra.mxu0 %v2955_v47  ;;  %v3041_v47 = vld [vmem:[#allocation5 + $0x244] ss:$24 sps:$4 sm:$0xff]  }
  0xda   :  { %2295 = vmatprep.subr.bf16.mxu0 %v2963_v49  ;;  %v3039_v49 = vld [vmem:[#allocation5 + $0x240] ss:$24 sps:$4 sm:$0xff]  }
  0xdd   :  { %2502 = vmatmul.mubr.msk.bf16.vlgmr.msra.gmra.mrb[4].mxu1 %vm438_vm4, %v407_v45  ;;  %2296 = vmatpush1.bf16.msra.mxu0 %v2961_v53  ;;  %v3047_v53 = vld [vmem:[#allocation5 + $0x274] ss:$24 sps:$4 sm:$0xff]  }
  0xde   :  { %547 = vmatpush1.bf16.msra.mxu1 %v455_v51  ;;  %578 = vmatprep.mubr.bf16.mxu1 %v3411_v0  ;;  %v2976_v0 = vld [vmem:[#allocation5 + $0x160] ss:$24 sps:$4 sm:$0xff]   ;;  %v3042_v51 = vld [vmem:[#allocation5 + $0x370] ss:$24 sps:$4 sm:$0xff]  }
  0xdf   :  { %2029 = vmatprep.subr.bf16.mxu1 %v2969_v54  ;;  %2297 = vmatprep.subr.bf16.mxu0 %v2966_v55  ;;  %v3050_v54 = vld [vmem:[#allocation5 + $0x3a4] ss:$24 sps:$4 sm:$0xff]   ;;  %v3045_v55 = vld [vmem:[#allocation5 + $0x270] ss:$24 sps:$4 sm:$0xff]  }
  0xe1   :  { %2298 = vmatpush1.bf16.msra.mxu0 %v2964_v56  ;;  %v3048_v56 = vld [vmem:[#allocation5 + $0x3a0] ss:$24 sps:$4 sm:$0xff]  }
  0xe2   :  { %2299 = vmatprep.subr.bf16.mxu0 %v2972_v57  ;;  %v3053_v57 = vld [vmem:[#allocation5 + $0x2a4] ss:$24 sps:$4 sm:$0xff]  }
  0xe5   :  { %2504 = vmatmul.mubr.msk.bf16.vlgmr.msra.gmra.mrb[8].mxu1 %vm438_vm4, %v407_v45  ;;  %2300 = vmatpush1.bf16.msra.mxu0 %v2970_v59  ;;  %v3033_v45 = vld [vmem:[#allocation5 + $0x210] ss:$24 sps:$4 sm:$0xff]   ;;  %v3051_v59 = vld [vmem:[#allocation5 + $0x2a0] ss:$24 sps:$4 sm:$0xff]  }
  0xe6   :  { %2030 = vmatpush1.bf16.msra.mxu1 %v2967_v58  ;;  %2061 = vmatprep.mubr.bf16.mxu1 %v3524_v31  ;;  %v3056_v58 = vld [vmem:[#allocation5 + $0x3d4] ss:$24 sps:$4 sm:$0xff]  }
  0xe7   :  { %2031 = vmatprep.subr.bf16.mxu1 %v2975_v60  ;;  %2301 = vmatprep.subr.bf16.mxu0 %v2978_v61  ;;  %v3054_v60 = vld [vmem:[#allocation5 + $0x3d0] ss:$24 sps:$4 sm:$0xff]   ;;  %v3059_v61 = vld [vmem:[#allocation5 + $0x2d4] ss:$24 sps:$4 sm:$0xff]  }
  0xe9   :  { %2302 = vmatpush1.bf16.msra.mxu0 %v2976_v0  ;;  %v3057_v0 = vld [vmem:[#allocation5 + $0x2d0] ss:$24 sps:$4 sm:$0xff]  }
  0xea   :  { %2032 = vmatpush1.bf16.msra.mxu1 %v2973_v62  ;;  %2303 = vmatprep.subr.bf16.mxu0 %v2984_v1  ;;  %v3062_v62 = vld [vmem:[#allocation5 + $0x404] ss:$24 sps:$4 sm:$0xff]  }
  0xeb   :  { %2033 = vmatprep.subr.bf16.mxu1 %v2981_v63  ;;  %v3060_v63 = vld [vmem:[#allocation5 + $0x400] ss:$24 sps:$4 sm:$0xff]   ;;  %v3065_v1 = vld [vmem:[#allocation5 + $0xc] ss:$24 sps:$4 sm:$0xff]  }
  0xed   :  { %2304 = vmatpush1.bf16.msra.mxu0 %v2982_v3  ;;  %v3063_v3 = vld [vmem:[#allocation5 + $0x8] ss:$24 sps:$4 sm:$0xff]  }
  0xee   :  { %2034 = vmatpush1.bf16.msra.mxu1 %v2979_v2  ;;  %2305 = vmatprep.subr.bf16.mxu0 %v2990_v5  ;;  %v3068_v2 = vld [vmem:[#allocation5 + $0x434] ss:$24 sps:$4 sm:$0xff]  }
  0xef   :  { %2035 = vmatprep.subr.bf16.mxu1 %v2987_v4  ;;  %v3066_v4 = vld [vmem:[#allocation5 + $0x430] ss:$24 sps:$4 sm:$0xff]   ;;  %v3071_v5 = vld [vmem:[#allocation5 + $0x3c] ss:$24 sps:$4 sm:$0xff]  }
  0xf1   :  { %2306 = vmatpush1.bf16.msra.mxu0 %v2988_v7  ;;  %v3069_v7 = vld [vmem:[#allocation5 + $0x38] ss:$24 sps:$4 sm:$0xff]  }
  0xf2   :  { %2036 = vmatpush1.bf16.msra.mxu1 %v2985_v6  ;;  %2307 = vmatprep.subr.bf16.mxu0 %v2996_v9  ;;  %v3074_v6 = vld [vmem:[#allocation5 + $0x464] ss:$24 sps:$4 sm:$0xff]  }
  0xf3   :  { %2037 = vmatprep.subr.bf16.mxu1 %v2993_v8  ;;  %v3072_v8 = vld [vmem:[#allocation5 + $0x460] ss:$24 sps:$4 sm:$0xff]   ;;  %v3077_v9 = vld [vmem:[#allocation5 + $0x6c] ss:$24 sps:$4 sm:$0xff]  }
  0xf5   :  { %2308 = vmatpush1.bf16.msra.mxu0 %v2994_v11  ;;  %v3075_v11 = vld [vmem:[#allocation5 + $0x68] ss:$24 sps:$4 sm:$0xff]  }
  0xf6   :  { %2038 = vmatpush1.bf16.msra.mxu1 %v2991_v10  ;;  %2309 = vmatprep.subr.bf16.mxu0 %v3002_v13  ;;  %v3080_v10 = vld [vmem:[#allocation5 + $0x494] ss:$24 sps:$4 sm:$0xff]  }
  0xf7   :  { %2039 = vmatprep.subr.bf16.mxu1 %v2999_v12  ;;  %v3078_v12 = vld [vmem:[#allocation5 + $0x490] ss:$24 sps:$4 sm:$0xff]   ;;  %v3083_v13 = vld [vmem:[#allocation5 + $0x9c] ss:$24 sps:$4 sm:$0xff]  }
  0xf9   :  { %2310 = vmatpush1.bf16.msra.mxu0 %v3000_v15  ;;  %v3081_v15 = vld [vmem:[#allocation5 + $0x98] ss:$24 sps:$4 sm:$0xff]  }
  0xfa   :  { %2040 = vmatpush1.bf16.msra.mxu1 %v2997_v14  ;;  %2311 = vmatprep.subr.bf16.mxu0 %v3008_v17  ;;  %v3086_v14 = vld [vmem:[#allocation5 + $0x4c4] ss:$24 sps:$4 sm:$0xff]   ;;  %v3092_v17 = vld [vmem:[#allocation5 + $0x4f4] ss:$24 sps:$4 sm:$0xff]  }
  0xfb   :  { %2041 = vmatprep.subr.bf16.mxu1 %v3005_v16  ;;  %v3084_v16 = vld [vmem:[#allocation5 + $0x4c0] ss:$24 sps:$4 sm:$0xff]  }
  0xfd   :  { %2312 = vmatpush1.bf16.msra.mxu0 %v3006_v19  ;;  %v3090_v19 = vld [vmem:[#allocation5 + $0x4f0] ss:$24 sps:$4 sm:$0xff]  }
  0xfe   :  { %2042 = vmatpush1.bf16.msra.mxu1 %v3003_v18  ;;  %2313 = vmatprep.subr.bf16.mxu0 %v3014_v23  ;;  %v3087_v18 = vld [vmem:[#allocation5 + $0xc8] ss:$24 sps:$4 sm:$0xff]   ;;  %v3098_v23 = vld [vmem:[#allocation5 + $0x524] ss:$24 sps:$4 sm:$0xff]  }
  0xff   :  { %2043 = vmatprep.subr.bf16.mxu1 %v3011_v21  ;;  %v3095_v21 = vld [vmem:[#allocation5 + $0xfc] ss:$24 sps:$4 sm:$0xff]  }
 0x101   :  { %2314 = vmatpush1.bf16.msra.mxu0 %v3012_v25  ;;  %v3096_v25 = vld [vmem:[#allocation5 + $0x520] ss:$24 sps:$4 sm:$0xff]  }
 0x102   :  { %2044 = vmatpush1.bf16.msra.mxu1 %v3009_v24  ;;  %2315 = vmatprep.subr.bf16.mxu0 %v3020_v27  ;;  %v3093_v24 = vld [vmem:[#allocation5 + $0xf8] ss:$24 sps:$4 sm:$0xff]   ;;  %v3104_v27 = vld [vmem:[#allocation5 + $0x554] ss:$24 sps:$4 sm:$0xff]  }
 0x103   :  { %2045 = vmatprep.subr.bf16.mxu1 %v3017_v26  ;;  %v3101_v26 = vld [vmem:[#allocation5 + $0x12c] ss:$24 sps:$4 sm:$0xff]  }
 0x105   :  { %2316 = vmatpush1.bf16.msra.mxu0 %v3018_v30  ;;  %v3102_v30 = vld [vmem:[#allocation5 + $0x550] ss:$24 sps:$4 sm:$0xff]  }
 0x106   :  { %2046 = vmatpush1.bf16.msra.mxu1 %v3015_v29  ;;  %2317 = vmatprep.subr.bf16.mxu0 %v3026_v33  ;;  %v3099_v29 = vld [vmem:[#allocation5 + $0x128] ss:$24 sps:$4 sm:$0xff]   ;;  %v3110_v33 = vld [vmem:[#allocation5 + $0x584] ss:$24 sps:$4 sm:$0xff]  }
 0x107   :  { %2047 = vmatprep.subr.bf16.mxu1 %v3023_v32  ;;  %v3107_v32 = vld [vmem:[#allocation5 + $0x15c] ss:$24 sps:$4 sm:$0xff]  }
 0x109   :  { %2318 = vmatpush1.bf16.msra.mxu0 %v3024_v35  ;;  %v3108_v35 = vld [vmem:[#allocation5 + $0x580] ss:$24 sps:$4 sm:$0xff]  }
 0x10a   :  { %2048 = vmatpush1.bf16.msra.mxu1 %v3021_v34  ;;  %2330 = vmatprep.subr.bf16.mxu0 %v3032_v39  ;;  %v3105_v34 = vld [vmem:[#allocation5 + $0x158] ss:$24 sps:$4 sm:$0xff]  }
 0x10b   :  { %2049 = vmatprep.subr.bf16.mxu1 %v3029_v36  ;;  %v3113_v36 = vld [vmem:[#allocation5 + $0x18c] ss:$24 sps:$4 sm:$0xff]   ;;  %v3114_v39 = vld [vmem:[#allocation5 + $0x5b0] ss:$24 sps:$4 sm:$0xff]  }
 0x10c   :  { %2320 = vmatmul.mubr.bf16.vlgmr.msra.gmra.mrb[4].mxu0 %v3537_v41 }
 0x10d   :  { %2331 = vmatpush1.bf16.msra.mxu0 %v3030_v42  ;;  %2362 = vmatprep.mubr.bf16.mxu0 %v3509_v22  ;;  %v3122_v42 = vld [vmem:[#allocation5 + $0x5e4] ss:$24 sps:$4 sm:$0xff]  }
 0x10e   :  { %2050 = vmatpush1.bf16.msra.mxu1 %v3027_v40  ;;  %2332 = vmatprep.subr.bf16.mxu0 %v3038_v44  ;;  %v3119_v40 = vld [vmem:[#allocation5 + $0x1bc] ss:$24 sps:$4 sm:$0xff]   ;;  %v3120_v44 = vld [vmem:[#allocation5 + $0x5e0] ss:$24 sps:$4 sm:$0xff]  }
 0x10f   :  { %2051 = vmatprep.subr.bf16.mxu1 %v3035_v43  ;;  %v3117_v43 = vld [vmem:[#allocation5 + $0x1b8] ss:$24 sps:$4 sm:$0xff]  }
 0x111   :  { %2333 = vmatpush1.bf16.msra.mxu0 %v3036_v46  ;;  %v3128_v46 = vld [vmem:[#allocation5 + $0x614] ss:$24 sps:$4 sm:$0xff]  }
 0x112   :  { %2052 = vmatpush1.bf16.msra.mxu1 %v3033_v45  ;;  %2334 = vmatprep.subr.bf16.mxu0 %v3044_v48  ;;  %v3125_v45 = vld [vmem:[#allocation5 + $0x1ec] ss:$24 sps:$4 sm:$0xff]   ;;  %v3126_v48 = vld [vmem:[#allocation5 + $0x610] ss:$24 sps:$4 sm:$0xff]  }
 0x113   :  { %2053 = vmatprep.subr.bf16.mxu1 %v3041_v47  ;;  %v3123_v47 = vld [vmem:[#allocation5 + $0x1e8] ss:$24 sps:$4 sm:$0xff]  }
 0x115   :  { %2335 = vmatpush1.bf16.msra.mxu0 %v3042_v51  ;;  %v3134_v51 = vld [vmem:[#allocation5 + $0x644] ss:$24 sps:$4 sm:$0xff]  }
 0x116   :  { %2054 = vmatpush1.bf16.msra.mxu1 %v3039_v49  ;;  %2336 = vmatprep.subr.bf16.mxu0 %v3050_v54  ;;  %v3131_v49 = vld [vmem:[#allocation5 + $0x21c] ss:$24 sps:$4 sm:$0xff]   ;;  %v3132_v54 = vld [vmem:[#allocation5 + $0x640] ss:$24 sps:$4 sm:$0xff]  }
 0x117   :  { %2055 = vmatprep.subr.bf16.mxu1 %v3047_v53  ;;  %v3129_v53 = vld [vmem:[#allocation5 + $0x218] ss:$24 sps:$4 sm:$0xff]  }
 0x119   :  { %2337 = vmatpush1.bf16.msra.mxu0 %v3048_v56  ;;  %v3140_v56 = vld [vmem:[#allocation5 + $0x674] ss:$24 sps:$4 sm:$0xff]  }
 0x11a   :  { %2056 = vmatpush1.bf16.msra.mxu1 %v3045_v55  ;;  %2338 = vmatprep.subr.bf16.mxu0 %v3056_v58  ;;  %v3137_v55 = vld [vmem:[#allocation5 + $0x24c] ss:$24 sps:$4 sm:$0xff]   ;;  %v3138_v58 = vld [vmem:[#allocation5 + $0x670] ss:$24 sps:$4 sm:$0xff]  }
 0x11b   :  { %2057 = vmatprep.subr.bf16.mxu1 %v3053_v57  ;;  %v3135_v57 = vld [vmem:[#allocation5 + $0x248] ss:$24 sps:$4 sm:$0xff]  }
 0x11d   :  { %2339 = vmatpush1.bf16.msra.mxu0 %v3054_v60  ;;  %v3146_v60 = vld [vmem:[#allocation5 + $0x6a4] ss:$24 sps:$4 sm:$0xff]  }
 0x11e   :  { %2058 = vmatpush1.bf16.msra.mxu1 %v3051_v59  ;;  %2340 = vmatprep.subr.bf16.mxu0 %v3062_v62  ;;  %v3143_v59 = vld [vmem:[#allocation5 + $0x27c] ss:$24 sps:$4 sm:$0xff]   ;;  %v3144_v62 = vld [vmem:[#allocation5 + $0x6a0] ss:$24 sps:$4 sm:$0xff]  }
 0x11f   :  { %2059 = vmatprep.subr.bf16.mxu1 %v3059_v61  ;;  %v3141_v61 = vld [vmem:[#allocation5 + $0x278] ss:$24 sps:$4 sm:$0xff]  }
 0x121   :  { %2341 = vmatpush1.bf16.msra.mxu0 %v3060_v63  ;;  %v3152_v63 = vld [vmem:[#allocation5 + $0x6d4] ss:$24 sps:$4 sm:$0xff]  }
 0x122   :  { %2060 = vmatpush1.bf16.msra.mxu1 %v3057_v0  ;;  %2342 = vmatprep.subr.bf16.mxu0 %v3068_v2  ;;  %v3149_v0 = vld [vmem:[#allocation5 + $0x2ac] ss:$24 sps:$4 sm:$0xff]   ;;  %v3150_v2 = vld [vmem:[#allocation5 + $0x6d0] ss:$24 sps:$4 sm:$0xff]  }
 0x123   :  { %2158 = vmatprep.subr.bf16.mxu1 %v3065_v1  ;;  %v3147_v1 = vld [vmem:[#allocation5 + $0x2a8] ss:$24 sps:$4 sm:$0xff]  }
 0x125   :  { %2062 = vmatmul.mubr.bf16.vlgmr.msra.gmra.mrb[0].mxu1 %v3537_v41  ;;  %2343 = vmatpush1.bf16.msra.mxu0 %v3066_v4  ;;  %v3158_v4 = vld [vmem:[#allocation5 + $0x704] ss:$24 sps:$4 sm:$0xff]  }
 0x126   :  { %2159 = vmatpush1.bf16.msra.mxu1 %v3063_v3  ;;  %2190 = vmatprep.mubr.bf16.mxu1 %v3524_v31  ;;  %v3089_v31 = vld [vmem:[#allocation5 + $0xcc] ss:$24 sps:$4 sm:$0xff]   ;;  %v3155_v3 = vld [vmem:[#allocation5 + $0x2dc] ss:$24 sps:$4 sm:$0xff]  }
 0x127   :  { %2160 = vmatprep.subr.bf16.mxu1 %v3071_v5  ;;  %2344 = vmatprep.subr.bf16.mxu0 %v3074_v6  ;;  %v3153_v5 = vld [vmem:[#allocation5 + $0x2d8] ss:$24 sps:$4 sm:$0xff]  }
 0x128   :  { %v3156_v6 = vld [vmem:[#allocation5 + $0x700] ss:$24 sps:$4 sm:$0xff]  }
 0x129   :  { %2345 = vmatpush1.bf16.msra.mxu0 %v3072_v8  ;;  %v3164_v8 = vld [vmem:[#allocation5 + $0x734] ss:$24 sps:$4 sm:$0xff]  }
 0x12a   :  { %2161 = vmatpush1.bf16.msra.mxu1 %v3069_v7  ;;  %2346 = vmatprep.subr.bf16.mxu0 %v3080_v10  ;;  %v3161_v7 = vld [vmem:[#allocation5 + $0x30c] ss:$24 sps:$4 sm:$0xff]   ;;  %v3162_v10 = vld [vmem:[#allocation5 + $0x730] ss:$24 sps:$4 sm:$0xff]  }
 0x12b   :  { %2162 = vmatprep.subr.bf16.mxu1 %v3077_v9  ;;  %v3159_v9 = vld [vmem:[#allocation5 + $0x308] ss:$24 sps:$4 sm:$0xff]  }
 0x12d   :  { %2347 = vmatpush1.bf16.msra.mxu0 %v3078_v12  ;;  %v3170_v12 = vld [vmem:[#allocation5 + $0x764] ss:$24 sps:$4 sm:$0xff]  }
 0x12e   :  { %2163 = vmatpush1.bf16.msra.mxu1 %v3075_v11  ;;  %2348 = vmatprep.subr.bf16.mxu0 %v3086_v14  ;;  %v3167_v11 = vld [vmem:[#allocation5 + $0x33c] ss:$24 sps:$4 sm:$0xff]   ;;  %v3168_v14 = vld [vmem:[#allocation5 + $0x760] ss:$24 sps:$4 sm:$0xff]  }
 0x12f   :  { %2164 = vmatprep.subr.bf16.mxu1 %v3083_v13  ;;  %v3165_v13 = vld [vmem:[#allocation5 + $0x338] ss:$24 sps:$4 sm:$0xff]  }
 0x131   :  { %2349 = vmatpush1.bf16.msra.mxu0 %v3084_v16  ;;  %v3176_v16 = vld [vmem:[#allocation5 + $0x794] ss:$24 sps:$4 sm:$0xff]  }
 0x132   :  { %2165 = vmatpush1.bf16.msra.mxu1 %v3081_v15  ;;  %2350 = vmatprep.subr.bf16.mxu0 %v3092_v17  ;;  %v3173_v15 = vld [vmem:[#allocation5 + $0x36c] ss:$24 sps:$4 sm:$0xff]   ;;  %v3174_v17 = vld [vmem:[#allocation5 + $0x790] ss:$24 sps:$4 sm:$0xff]  }
 0x133   :  { %2166 = vmatprep.subr.bf16.mxu1 %v3089_v31  ;;  %v3171_v31 = vld [vmem:[#allocation5 + $0x368] ss:$24 sps:$4 sm:$0xff]  }
 0x135   :  { %2351 = vmatpush1.bf16.msra.mxu0 %v3090_v19  ;;  %v3182_v19 = vld [vmem:[#allocation5 + $0x7c4] ss:$24 sps:$4 sm:$0xff]  }
 0x136   :  { %2167 = vmatpush1.bf16.msra.mxu1 %v3087_v18  ;;  %2352 = vmatprep.subr.bf16.mxu0 %v3098_v23  ;;  %v3179_v18 = vld [vmem:[#allocation5 + $0x39c] ss:$24 sps:$4 sm:$0xff]  }
 0x137   :  { %2168 = vmatprep.subr.bf16.mxu1 %v3095_v21  ;;  %v3180_v21 = vld [vmem:[#allocation5 + $0x7c0] ss:$24 sps:$4 sm:$0xff]   ;;  %v3188_v23 = vld [vmem:[#allocation5 + $0x7f4] ss:$24 sps:$4 sm:$0xff]  }
 0x139   :  { %2353 = vmatpush1.bf16.msra.mxu0 %v3096_v25  ;;  %v3186_v25 = vld [vmem:[#allocation5 + $0x7f0] ss:$24 sps:$4 sm:$0xff]  }
 0x13a   :  { %2169 = vmatpush1.bf16.msra.mxu1 %v3093_v24  ;;  %2354 = vmatprep.subr.bf16.mxu0 %v3104_v27  ;;  %v3183_v24 = vld [vmem:[#allocation5 + $0x3c8] ss:$24 sps:$4 sm:$0xff]   ;;  %v3194_v27 = vld [vmem:[#allocation5 + $0x824] ss:$24 sps:$4 sm:$0xff]  }
 0x13b   :  { %2170 = vmatprep.subr.bf16.mxu1 %v3101_v26  ;;  %v3191_v26 = vld [vmem:[#allocation5 + $0x3fc] ss:$24 sps:$4 sm:$0xff]  }
 0x13d   :  { %2355 = vmatpush1.bf16.msra.mxu0 %v3102_v30  ;;  %v3192_v30 = vld [vmem:[#allocation5 + $0x820] ss:$24 sps:$4 sm:$0xff]  }
 0x13e   :  { %2171 = vmatpush1.bf16.msra.mxu1 %v3099_v29  ;;  %2356 = vmatprep.subr.bf16.mxu0 %v3110_v33  ;;  %v3189_v29 = vld [vmem:[#allocation5 + $0x3f8] ss:$24 sps:$4 sm:$0xff]   ;;  %v3200_v33 = vld [vmem:[#allocation5 + $0x854] ss:$24 sps:$4 sm:$0xff]  }
 0x13f   :  { %2172 = vmatprep.subr.bf16.mxu1 %v3107_v32  ;;  %v3197_v32 = vld [vmem:[#allocation5 + $0x42c] ss:$24 sps:$4 sm:$0xff]  }
 0x141   :  { %2357 = vmatpush1.bf16.msra.mxu0 %v3108_v35  ;;  %v3198_v35 = vld [vmem:[#allocation5 + $0x850] ss:$24 sps:$4 sm:$0xff]  }
 0x142   :  { %2173 = vmatpush1.bf16.msra.mxu1 %v3105_v34  ;;  %2358 = vmatprep.subr.bf16.mxu0 %v3116_v37  ;;  %v3195_v34 = vld [vmem:[#allocation5 + $0x428] ss:$24 sps:$4 sm:$0xff]   ;;  %v3206_v37 = vld [vmem:[#allocation5 + $0x884] ss:$24 sps:$4 sm:$0xff]  }
 0x143   :  { %2174 = vmatprep.subr.bf16.mxu1 %v3113_v36  ;;  %v3203_v36 = vld [vmem:[#allocation5 + $0x45c] ss:$24 sps:$4 sm:$0xff]  }
 0x145   :  { %2359 = vmatpush1.bf16.msra.mxu0 %v3114_v39  ;;  %v3204_v39 = vld [vmem:[#allocation5 + $0x880] ss:$24 sps:$4 sm:$0xff]  }
 0x146   :  { %2175 = vmatpush1.bf16.msra.mxu1 %v3111_v38  ;;  %2360 = vmatprep.subr.bf16.mxu0 %v3122_v42  ;;  %v3201_v38 = vld [vmem:[#allocation5 + $0x458] ss:$24 sps:$4 sm:$0xff]   ;;  %v3212_v42 = vld [vmem:[#allocation5 + $0x8b4] ss:$24 sps:$4 sm:$0xff]  }
 0x147   :  { %2176 = vmatprep.subr.bf16.mxu1 %v3119_v40  ;;  %v3209_v40 = vld [vmem:[#allocation5 + $0x48c] ss:$24 sps:$4 sm:$0xff]  }
 0x149   :  { %2361 = vmatpush1.bf16.msra.mxu0 %v3120_v44  ;;  %v3210_v44 = vld [vmem:[#allocation5 + $0x8b0] ss:$24 sps:$4 sm:$0xff]  }
 0x14a   :  { %2177 = vmatpush1.bf16.msra.mxu1 %v3117_v43  ;;  %2373 = vmatprep.subr.bf16.mxu0 %v3128_v46  ;;  %v3207_v43 = vld [vmem:[#allocation5 + $0x488] ss:$24 sps:$4 sm:$0xff]   ;;  %v3218_v46 = vld [vmem:[#allocation5 + $0x8e4] ss:$24 sps:$4 sm:$0xff]  }
 0x14b   :  { %2178 = vmatprep.subr.bf16.mxu1 %v3125_v45  ;;  %v3215_v45 = vld [vmem:[#allocation5 + $0x4bc] ss:$24 sps:$4 sm:$0xff]  }
 0x14c   :  { %2363 = vmatmul.mubr.bf16.vlgmr.msra.gmra.mrb[4].mxu0 %v3515_v50 }
 0x14d   :  { %2374 = vmatpush1.bf16.msra.mxu0 %v3126_v48  ;;  %2405 = vmatprep.mubr.bf16.mxu0 %v3517_v52  ;;  %v3216_v48 = vld [vmem:[#allocation5 + $0x8e0] ss:$24 sps:$4 sm:$0xff]  }
 0x14e   :  { %2179 = vmatpush1.bf16.msra.mxu1 %v3123_v47  ;;  %2375 = vmatprep.subr.bf16.mxu0 %v3134_v51  ;;  %v3213_v47 = vld [vmem:[#allocation5 + $0x4b8] ss:$24 sps:$4 sm:$0xff]   ;;  %v3219_v51 = vld [vmem:[#allocation5 + $0x4e8] ss:$24 sps:$4 sm:$0xff]  }
 0x14f   :  { %2180 = vmatprep.subr.bf16.mxu1 %v3131_v49  ;;  %v3221_v49 = vld [vmem:[#allocation5 + $0x4ec] ss:$24 sps:$4 sm:$0xff]  }
 0x151   :  { %2376 = vmatpush1.bf16.msra.mxu0 %v3132_v54  ;;  %v3222_v54 = vld [vmem:[#allocation5 + $0x518] ss:$24 sps:$4 sm:$0xff]  }
 0x152   :  { %2181 = vmatpush1.bf16.msra.mxu1 %v3129_v53  ;;  %2377 = vmatprep.subr.bf16.mxu0 %v3140_v56  ;;  %v3224_v53 = vld [vmem:[#allocation5 + $0x51c] ss:$24 sps:$4 sm:$0xff]   ;;  %v3225_v56 = vld [vmem:[#allocation5 + $0x548] ss:$24 sps:$4 sm:$0xff]  }
 0x153   :  { %2182 = vmatprep.subr.bf16.mxu1 %v3137_v55  ;;  %v3227_v55 = vld [vmem:[#allocation5 + $0x54c] ss:$24 sps:$4 sm:$0xff]  }
 0x155   :  { %2378 = vmatpush1.bf16.msra.mxu0 %v3138_v58  ;;  %v3228_v58 = vld [vmem:[#allocation5 + $0x578] ss:$24 sps:$4 sm:$0xff]  }
 0x156   :  { %2183 = vmatpush1.bf16.msra.mxu1 %v3135_v57  ;;  %2379 = vmatprep.subr.bf16.mxu0 %v3146_v60  ;;  %v3230_v57 = vld [vmem:[#allocation5 + $0x57c] ss:$24 sps:$4 sm:$0xff]   ;;  %v3231_v60 = vld [vmem:[#allocation5 + $0x5a8] ss:$24 sps:$4 sm:$0xff]  }
 0x157   :  { %2184 = vmatprep.subr.bf16.mxu1 %v3143_v59  ;;  %v3233_v59 = vld [vmem:[#allocation5 + $0x5ac] ss:$24 sps:$4 sm:$0xff]  }
 0x159   :  { %2380 = vmatpush1.bf16.msra.mxu0 %v3144_v62  ;;  %v3234_v62 = vld [vmem:[#allocation5 + $0x5d8] ss:$24 sps:$4 sm:$0xff]  }
 0x15a   :  { %2185 = vmatpush1.bf16.msra.mxu1 %v3141_v61  ;;  %2381 = vmatprep.subr.bf16.mxu0 %v3152_v63  ;;  %v3236_v61 = vld [vmem:[#allocation5 + $0x5dc] ss:$24 sps:$4 sm:$0xff]  }
 0x15b   :  { %2186 = vmatprep.subr.bf16.mxu1 %v3149_v0  ;;  %v3239_v0 = vld [vmem:[#allocation5 + $0x60c] ss:$24 sps:$4 sm:$0xff]  }
 0x15d   :  { %2382 = vmatpush1.bf16.msra.mxu0 %v3150_v2 }
 0x15e   :  { %2187 = vmatpush1.bf16.msra.mxu1 %v3147_v1  ;;  %2383 = vmatprep.subr.bf16.mxu0 %v3158_v4  ;;  %v3237_v1 = vld [vmem:[#allocation5 + $0x608] ss:$24 sps:$4 sm:$0xff]  }
 0x15f   :  { %2188 = vmatprep.subr.bf16.mxu1 %v3155_v3  ;;  %v3242_v3 = vld [vmem:[#allocation5 + $0x63c] ss:$24 sps:$4 sm:$0xff]  }
 0x161   :  { %2384 = vmatpush1.bf16.msra.mxu0 %v3156_v6  ;;  %v3240_v6 = vld [vmem:[#allocation5 + $0x638] ss:$24 sps:$4 sm:$0xff]  }
 0x162   :  { %2189 = vmatpush1.bf16.msra.mxu1 %v3153_v5  ;;  %2385 = vmatprep.subr.bf16.mxu0 %v3164_v8  ;;  %v3243_v8 = vld [vmem:[#allocation5 + $0x668] ss:$24 sps:$4 sm:$0xff]  }
 0x163   :  { %2201 = vmatprep.subr.bf16.mxu1 %v3161_v7  ;;  %v3245_v7 = vld [vmem:[#allocation5 + $0x66c] ss:$24 sps:$4 sm:$0xff]  }
 0x165   :  { %2191 = vmatmul.mubr.bf16.vlgmr.msra.gmra.mrb[4].mxu1 %v3537_v41  ;;  %2386 = vmatpush1.bf16.msra.mxu0 %v3162_v10  ;;  %v3177_v41 = vld [vmem:[#allocation5 + $0x398] ss:$24 sps:$4 sm:$0xff]  }
 0x166   :  { %2202 = vmatpush1.bf16.msra.mxu1 %v3159_v9  ;;  %2233 = vmatprep.mubr.bf16.mxu1 %v3509_v22  ;;  %v3185_v22 = vld [vmem:[#allocation5 + $0x3cc] ss:$24 sps:$4 sm:$0xff]   ;;  %v3248_v9 = vld [vmem:[#allocation5 + $0x69c] ss:$24 sps:$4 sm:$0xff]   ;;  %v3246_v10 = vld [vmem:[#allocation5 + $0x698] ss:$24 sps:$4 sm:$0xff]  }
 0x167   :  { %2203 = vmatprep.subr.bf16.mxu1 %v3167_v11  ;;  %2387 = vmatprep.subr.bf16.mxu0 %v3170_v12  ;;  %v3251_v11 = vld [vmem:[#allocation5 + $0x6cc] ss:$24 sps:$4 sm:$0xff]   ;;  %v3249_v12 = vld [vmem:[#allocation5 + $0x6c8] ss:$24 sps:$4 sm:$0xff]  }
 0x169   :  { %2388 = vmatpush1.bf16.msra.mxu0 %v3168_v14  ;;  %v3257_v14 = vld [vmem:[#allocation5 + $0x72c] ss:$24 sps:$4 sm:$0xff]  }
 0x16a   :  { %2204 = vmatpush1.bf16.msra.mxu1 %v3165_v13  ;;  %2389 = vmatprep.subr.bf16.mxu0 %v3176_v16  ;;  %v3254_v13 = vld [vmem:[#allocation5 + $0x6fc] ss:$24 sps:$4 sm:$0xff]  }
 0x16b   :  { %2205 = vmatprep.subr.bf16.mxu1 %v3173_v15 }
 0x16d   :  { %2390 = vmatpush1.bf16.msra.mxu0 %v3174_v17 }
 0x16e   :  { %2206 = vmatpush1.bf16.msra.mxu1 %v3171_v31  ;;  %2391 = vmatprep.subr.bf16.mxu0 %v3182_v19  ;;  %v3255_v31 = vld [vmem:[#allocation5 + $0x728] ss:$24 sps:$4 sm:$0xff]   ;;  %v3258_v19 = vld [vmem:[#allocation5 + $0x758] ss:$24 sps:$4 sm:$0xff]  }
 0x16f   :  { %2207 = vmatprep.subr.bf16.mxu1 %v3179_v18  ;;  %v3260_v18 = vld [vmem:[#allocation5 + $0x75c] ss:$24 sps:$4 sm:$0xff]  }
 0x171   :  { %2392 = vmatpush1.bf16.msra.mxu0 %v3180_v21  ;;  %v3261_v21 = vld [vmem:[#allocation5 + $0x788] ss:$24 sps:$4 sm:$0xff]  }
 0x172   :  { %2208 = vmatpush1.bf16.msra.mxu1 %v3177_v41  ;;  %2393 = vmatprep.subr.bf16.mxu0 %v3188_v23  ;;  %v3263_v41 = vld [vmem:[#allocation5 + $0x78c] ss:$24 sps:$4 sm:$0xff]   ;;  %v3264_v23 = vld [vmem:[#allocation5 + $0x7b8] ss:$24 sps:$4 sm:$0xff]  }
 0x173   :  { %2209 = vmatprep.subr.bf16.mxu1 %v3185_v22  ;;  %v3266_v22 = vld [vmem:[#allocation5 + $0x7bc] ss:$24 sps:$4 sm:$0xff]  }
 0x175   :  { %2394 = vmatpush1.bf16.msra.mxu0 %v3186_v25  ;;  %v3267_v25 = vld [vmem:[#allocation5 + $0x7e8] ss:$24 sps:$4 sm:$0xff]  }
 0x176   :  { %2210 = vmatpush1.bf16.msra.mxu1 %v3183_v24  ;;  %2395 = vmatprep.subr.bf16.mxu0 %v3194_v27  ;;  %v3269_v24 = vld [vmem:[#allocation5 + $0x7ec] ss:$24 sps:$4 sm:$0xff]   ;;  %v3270_v27 = vld [vmem:[#allocation5 + $0x818] ss:$24 sps:$4 sm:$0xff]  }
 0x177   :  { %2211 = vmatprep.subr.bf16.mxu1 %v3191_v26  ;;  %v3272_v26 = vld [vmem:[#allocation5 + $0x81c] ss:$24 sps:$4 sm:$0xff]  }
 0x179   :  { %2396 = vmatpush1.bf16.msra.mxu0 %v3192_v30  ;;  %v3273_v30 = vld [vmem:[#allocation5 + $0x848] ss:$24 sps:$4 sm:$0xff]  }
 0x17a   :  { %2212 = vmatpush1.bf16.msra.mxu1 %v3189_v29  ;;  %2397 = vmatprep.subr.bf16.mxu0 %v3200_v33  ;;  %v3275_v29 = vld [vmem:[#allocation5 + $0x84c] ss:$24 sps:$4 sm:$0xff]   ;;  %v3276_v33 = vld [vmem:[#allocation5 + $0x878] ss:$24 sps:$4 sm:$0xff]  }
 0x17b   :  { %2213 = vmatprep.subr.bf16.mxu1 %v3197_v32  ;;  %v3278_v32 = vld [vmem:[#allocation5 + $0x87c] ss:$24 sps:$4 sm:$0xff]  }
 0x17d   :  { %2398 = vmatpush1.bf16.msra.mxu0 %v3198_v35  ;;  %v3279_v35 = vld [vmem:[#allocation5 + $0x8a8] ss:$24 sps:$4 sm:$0xff]  }
 0x17e   :  { %2214 = vmatpush1.bf16.msra.mxu1 %v3195_v34  ;;  %2399 = vmatprep.subr.bf16.mxu0 %v3206_v37  ;;  %v3281_v34 = vld [vmem:[#allocation5 + $0x8ac] ss:$24 sps:$4 sm:$0xff]   ;;  %v3282_v37 = vld [vmem:[#allocation5 + $0x8d8] ss:$24 sps:$4 sm:$0xff]  }
 0x17f   :  { %2215 = vmatprep.subr.bf16.mxu1 %v3203_v36  ;;  %v3284_v36 = vld [vmem:[#allocation5 + $0x8dc] ss:$24 sps:$4 sm:$0xff]  }
 0x181   :  { %2400 = vmatpush1.bf16.msra.mxu0 %v3204_v39 }
 0x182   :  { %2216 = vmatpush1.bf16.msra.mxu1 %v3201_v38  ;;  %2401 = vmatprep.subr.bf16.mxu0 %v3212_v42  ;;  %v2419_v38 = vshrl.u32 %v383_v20, 7 }
 0x183   :  { %2217 = vmatprep.subr.bf16.mxu1 %v3209_v40  ;;  %v2416_v40 = vld [vmem:[#allocation8] sm:$0x3f] }
 0x184   :  { %v2420_v39 = vsub.s32 0, %v2419_v38  ;;  %v2424_v42 = vsub.s32 1, %v2419_v38 }
 0x185   :  { %2402 = vmatpush1.bf16.msra.mxu0 %v3210_v44 }
 0x186   :  { %2218 = vmatpush1.bf16.msra.mxu1 %v3207_v43  ;;  %2403 = vmatprep.subr.bf16.mxu0 %v3218_v46  ;;  %v2421_v43 = vrot.slane %v2416_v40, %v2420_v39 }
 0x187   :  { %2219 = vmatprep.subr.bf16.mxu1 %v3215_v45  ;;  %v2425_v45 = vrot.slane %v2416_v40, %v2424_v42 }
 0x189   :  { %2404 = vmatpush1.bf16.msra.mxu0 %v3216_v48 }
 0x18a   :  { %2220 = vmatpush1.bf16.msra.mxu1 %v3213_v47 }
 0x18b   :  { %2221 = vmatprep.subr.bf16.mxu1 %v3221_v49 }
 0x18c   :  { %2406 = vmatmul.mubr.bf16.vlgmr.msra.gmra.mrb[4].mxu0 %v3522_v28 }
 0x18e   :  { %2222 = vmatpush1.bf16.msra.mxu1 %v3219_v51 }
 0x18f   :  { %2223 = vmatprep.subr.bf16.mxu1 %v3224_v53 }
 0x192   :  { %2224 = vmatpush1.bf16.msra.mxu1 %v3222_v54 }
 0x193   :  { %2225 = vmatprep.subr.bf16.mxu1 %v3227_v55 }
 0x196   :  { %2226 = vmatpush1.bf16.msra.mxu1 %v3225_v56 }
 0x197   :  { %2227 = vmatprep.subr.bf16.mxu1 %v3230_v57  ;;  %v2436_v57 = vsub.s32 4, %v2419_v38 }
 0x19a   :  { %2228 = vmatpush1.bf16.msra.mxu1 %v3228_v58  ;;  %v2440_v58 = vsub.s32 5, %v2419_v38 }
 0x19b   :  { %2229 = vmatprep.subr.bf16.mxu1 %v3233_v59  ;;  %v2437_v59 = vrot.slane %v2416_v40, %v2436_v57 }
 0x19e   :  { %2230 = vmatpush1.bf16.msra.mxu1 %v3231_v60 }
 0x19f   :  { %2231 = vmatprep.subr.bf16.mxu1 %v3236_v61  ;;  %v3548_v63 = vpop.f32.mrb[0].mxu0  ;;  %v2441_v61 = vrot.slane %v2416_v40, %v2440_v58 }
 0x1a0   :  { %v3550_v2 = vpop.f32.mrb[1].mxu0 }
 0x1a1   :  { %v3552_v4 = vpop.f32.mrb[2].mxu0 }
 0x1a2   :  { %2232 = vmatpush1.bf16.msra.mxu1 %v3234_v62  ;;  %v3554_v5 = vpop.f32.mrb[3].mxu0 }
 0x1a3   :  { %2244 = vmatprep.subr.bf16.mxu1 %v3239_v0 }
 0x1a5   :  { %2234 = vmatmul.mubr.bf16.vlgmr.msra.gmra.mrb[4].mxu1 %v3515_v50  ;;  %v3252_v50 = vld [vmem:[#allocation5 + $0x6f8] ss:$24 sps:$4 sm:$0xff]  }
 0x1a6   :  { %2245 = vmatpush1.bf16.msra.mxu1 %v3237_v1  ;;  %2276 = vmatprep.mubr.bf16.mxu1 %v3517_v52 }
 0x1a7   :  { %2246 = vmatprep.subr.bf16.mxu1 %v3242_v3 }
 0x1aa   :  { %2247 = vmatpush1.bf16.msra.mxu1 %v3240_v6 }
 0x1ab   :  { %2248 = vmatprep.subr.bf16.mxu1 %v3245_v7 }
 0x1ae   :  { %2249 = vmatpush1.bf16.msra.mxu1 %v3243_v8 }
 0x1af   :  { %2250 = vmatprep.subr.bf16.mxu1 %v3248_v9  ;;  %v2428_v9 = vsub.s32 2, %v2419_v38 }
 0x1b2   :  { %2251 = vmatpush1.bf16.msra.mxu1 %v3246_v10  ;;  %v2432_v10 = vsub.s32 3, %v2419_v38 }
 0x1b3   :  { %2252 = vmatprep.subr.bf16.mxu1 %v3251_v11  ;;  %v2429_v11 = vrot.slane %v2416_v40, %v2428_v9 }
 0x1b6   :  { %2253 = vmatpush1.bf16.msra.mxu1 %v3249_v12  ;;  %v2433_v12 = vrot.slane %v2416_v40, %v2432_v10 }
 0x1b7   :  { %2254 = vmatprep.subr.bf16.mxu1 %v3254_v13 }
 0x1b8   :  { %v3558_v15 = vpop.f32.mrb[8].mxu1 }
 0x1b9   :  { %v3560_v52 = vpop.f32.mrb[9].mxu1 }
 0x1ba   :  { %2255 = vmatpush1.bf16.msra.mxu1 %v3252_v50  ;;  %v3562_v16 = vpop.f32.mrb[10].mxu1 }
 0x1bb   :  { %v3564_v17 = vpop.f32.mrb[11].mxu1  ;;  %2256 = vmatprep.subr.bf16.mxu1 %v3257_v14 }
 0x1be   :  { %2257 = vmatpush1.bf16.msra.mxu1 %v3255_v31 }
 0x1bf   :  { %2258 = vmatprep.subr.bf16.mxu1 %v3260_v18 }
 0x1c2   :  { %2259 = vmatpush1.bf16.msra.mxu1 %v3258_v19 }
 0x1c3   :  { %2260 = vmatprep.subr.bf16.mxu1 %v3263_v41 }
 0x1c6   :  { %2261 = vmatpush1.bf16.msra.mxu1 %v3261_v21 }
 0x1c7   :  { %2262 = vmatprep.subr.bf16.mxu1 %v3266_v22 }
 0x1ca   :  { %2263 = vmatpush1.bf16.msra.mxu1 %v3264_v23 }
 0x1cb   :  { %2264 = vmatprep.subr.bf16.mxu1 %v3269_v24 }
 0x1ce   :  { %2265 = vmatpush1.bf16.msra.mxu1 %v3267_v25 }
 0x1cf   :  { %2266 = vmatprep.subr.bf16.mxu1 %v3272_v26 }
 0x1d2   :  { %2267 = vmatpush1.bf16.msra.mxu1 %v3270_v27 }
 0x1d3   :  { %2268 = vmatprep.subr.bf16.mxu1 %v3275_v29 }
 0x1d6   :  { %2269 = vmatpush1.bf16.msra.mxu1 %v3273_v30 }
 0x1d7   :  { %2270 = vmatprep.subr.bf16.mxu1 %v3278_v32 }
 0x1da   :  { %2271 = vmatpush1.bf16.msra.mxu1 %v3276_v33 }
 0x1db   :  { %2272 = vmatprep.subr.bf16.mxu1 %v3281_v34 }
 0x1de   :  { %2273 = vmatpush1.bf16.msra.mxu1 %v3279_v35 }
 0x1df   :  { %2274 = vmatprep.subr.bf16.mxu1 %v3284_v36 }
 0x1e2   :  { %2275 = vmatpush1.bf16.msra.mxu1 %v3282_v37 }
 0x1e5   :  { %2277 = vmatmul.mubr.bf16.vlgmr.msra.gmra.mrb[4].mxu1 %v3522_v28 }
 0x1f8   :  { %v2063_v44 = vpop.f32.mrb[0].mxu1 }
 0x1f9   :  { %v2793_v46 = vadd.f32 %v3548_v63, %v2063_v44  ;;  %v2065_v47 = vpop.f32.mrb[1].mxu1 }
 0x1fa   :  { %v2794_v48 = vadd.f32 %v3550_v2, %v2065_v47  ;;  %v2067_v49 = vpop.f32.mrb[2].mxu1 }
 0x1fb   :  { %v2448_v51 = vadd.f32 %v2793_v46, %v2421_v43  ;;  %v2795_v53 = vadd.f32 %v3552_v4, %v2067_v49  ;;  %v2069_v54 = vpop.f32.mrb[3].mxu1 }
 0x1fc   :  { %v2449_v55 = vadd.f32 %v2794_v48, %v2425_v45  ;;  %v2796_v28 = vadd.f32 %v3554_v5, %v2069_v54 }
 0x1fd   :  { %2460 = vst [vmem:[#allocation10] sm:$0xff] %v2448_v51  ;;  %v2454_v20 = vadd.f32 %v2795_v53, %v2421_v43 }
 0x1fe   :  { %2461 = vst [vmem:[#allocation10 + $0x8] sm:$0xff] %v2449_v55  ;;  %v2455_v56 = vadd.f32 %v2796_v28, %v2425_v45 }
 0x1ff   :  { %2466 = vst [vmem:[#allocation10 + $0x30] sm:$0xff] %v2454_v20 }
 0x200   :  { %2467 = vst [vmem:[#allocation10 + $0x38] sm:$0xff] %v2455_v56 }
 0x25f   :  { %v2407_v60 = vpop.f32.mrb[4].mxu0 }
 0x260   :  { %v2797_v62 = vadd.f32 %v2407_v60, %v3558_v15  ;;  %v2409_v0 = vpop.f32.mrb[5].mxu0 }
 0x261   :  { %v2798_v63 = vadd.f32 %v2409_v0, %v3560_v52  ;;  %v2411_v1 = vpop.f32.mrb[6].mxu0 }
 0x262   :  { %v2452_v2 = vadd.f32 %v2797_v62, %v2437_v59  ;;  %v2799_v3 = vadd.f32 %v2411_v1, %v3562_v16  ;;  %v2413_v4 = vpop.f32.mrb[7].mxu0 }
 0x263   :  { %v2453_v5 = vadd.f32 %v2798_v63, %v2441_v61  ;;  %v2800_v6 = vadd.f32 %v2413_v4, %v3564_v17 }
 0x264   :  { %2464 = vst [vmem:[#allocation10 + $0x20] sm:$0xff] %v2452_v2  ;;  %v2458_v7 = vadd.f32 %v2799_v3, %v2437_v59 }
 0x265   :  { %2465 = vst [vmem:[#allocation10 + $0x28] sm:$0xff] %v2453_v5  ;;  %v2459_v8 = vadd.f32 %v2800_v6, %v2441_v61 }
 0x266   :  { %2470 = vst [vmem:[#allocation10 + $0x50] sm:$0xff] %v2458_v7 }
 0x267   :  { %2471 = vst [vmem:[#allocation10 + $0x58] sm:$0xff] %v2459_v8 }
 0x2b8   :  { %v2278_v13 = vpop.f32.mrb[4].mxu1 }
 0x2b9   :  { %v2450_v50 = vadd.f32 %v2429_v11, %v2278_v13  ;;  %v2280_v14 = vpop.f32.mrb[5].mxu1 }
 0x2ba   :  { %v2451_v15 = vadd.f32 %v2433_v12, %v2280_v14  ;;  %v2282_v52 = vpop.f32.mrb[6].mxu1 }
 0x2bb   :  { %2462 = vst [vmem:[#allocation10 + $0x10] sm:$0xff] %v2450_v50  ;;  %v2456_v16 = vadd.f32 %v2429_v11, %v2282_v52  ;;  %v2284_v31 = vpop.f32.mrb[7].mxu1 }
 0x2bc   :  { %2463 = vst [vmem:[#allocation10 + $0x18] sm:$0xff] %v2451_v15  ;;  %v2457_v17 = vadd.f32 %v2433_v12, %v2284_v31 }
 0x2bd   :  { %2468 = vst [vmem:[#allocation10 + $0x40] sm:$0xff] %v2456_v16 }
 0x2be   :  { %2469 = vst [vmem:[#allocation10 + $0x48] sm:$0xff] %v2457_v17 }
 0x2bf   :  { %3384 = shalt.err (!%p3381_p8)
}
 0x2c0   :  { %s3385_s24 = scalar_lea.hbm %s3593_s5, 1536 }
 0x2c1   :  { %p3386_p9 = scmp.ne.s32.totalorder %s3593_s5, %s3385_s24  ;;  %p3389_p10 = scmp.lt.u32.totalorder %s3385_s24, %s3593_s5 }
 0x2c3   :  { %p3391_p11 = pnand %p3389_p10, %p3386_p9 }
 0x2c5   :  { %3394 = shalt.err (!%p3391_p11)
}
 0x2c6   :  { %s3415_s6 = smov 768   ;;  %s3416_s7 = smov 48  }
 0x2c7   :  { %2483 = dma.vmem_to_hbm [thread:$0]  %s2478_s20, 1536, %s3593_s5, [#allocation4], %s3415_s6, %s3415_s6, %s3416_s7  }
 0x2c8   :  { %3401 = dma.done.wait [#allocation4], 1536  }
 0x2c9   :  { %3402 = vsyncadd [#allocation4], 4294965760 }
 0x2ca   :  { %2487 = vsyncpa [#allocation3], 1 }
 0x2cb   :  { %2488 = vsyncpa [#allocation6], 1 }
 0x2cc   :  { %2489 = vsyncpa [#allocation9], 1 }
 0x2cd   :  { %2490 = vsyncpa [#allocation4], 1 }

</bundles_post_ra>
